<compile_context>
chip_gen: v7x
topology: tpu7x:2x2x1
jax: 0.10.0
libtpu: 0.0.40
codegen_flags: <defaults>
</compile_context>

<pallas_src>
import functools

import jax
import jax.numpy as jnp
from jax import lax
from jax.experimental import pallas as pl
from jax.experimental.pallas import tpu as pltpu


PARAMS_PER_LAYER = 12  # wqkv, bqkv, wc, bc, g1, beta1, w1, bf1, w2, bf2, g2, beta2


# ---------------------------------------------------------------------------
# Fused kernel: embedding + num_layers encoder layers for a (Bt, N, *) block
# ---------------------------------------------------------------------------

def make_fused_encoder_kernel(num_layers, head_num, qkv_dim, eps=1e-5):

    def kernel(xy_ref, w_emb_ref, b_emb_ref, *rest):
        o_ref = rest[-1]
        layer_refs = rest[:-1]
        assert len(layer_refs) == PARAMS_PER_LAYER * num_layers

        Bt, N, _ = xy_ref.shape
        D = w_emb_ref.shape[1]
        M = Bt * N
        HDK = head_num * qkv_dim

        # ---- embedding: nn.Linear(2, D); K=2 -> do it on the VPU ----------
        xy = xy_ref[...]                                   # (Bt, N, 2)
        w_emb = w_emb_ref[...]                             # (2, D)
        x3 = (xy[:, :, 0:1] * w_emb[0:1, :]
              + xy[:, :, 1:2] * w_emb[1:2, :]
              + b_emb_ref[...])                            # (Bt, N, D)

        for li in range(num_layers):
            (wqkv_ref, bqkv_ref, wc_ref, bc_ref,
             g1_ref, beta1_ref,
             w1_ref, bf1_ref, w2_ref, bf2_ref,
             g2_ref, beta2_ref) = layer_refs[
                li * PARAMS_PER_LAYER:(li + 1) * PARAMS_PER_LAYER]

            # ---- fused QKV projection on the flattened (M, D) slab --------
            # Wq columns already carry the 1/sqrt(dk) scale (wrapper-side).
            x2 = x3.reshape(M, D)
            qkv2 = jnp.dot(x2, wqkv_ref[...],
                           preferred_element_type=jnp.float32) + bqkv_ref[...]
            qkv3 = qkv2.reshape(Bt, N, 3 * HDK)
            wc = wc_ref[...]                               # (HDK, D)

            # ---- multi-head attention: batched over Bt per head; the head
            # concat is folded into the combine projection (per-head accum).
            mh2 = jnp.zeros((M, D), jnp.float32)
            for h in range(head_num):
                lo = h * qkv_dim
                hi = lo + qkv_dim
                qh = qkv3[:, :, lo:hi]                     # (Bt, N, dk) pre-scaled
                kh = qkv3[:, :, HDK + lo:HDK + hi]
                vh = qkv3[:, :, 2 * HDK + lo:2 * HDK + hi]
                s = jnp.einsum('bnd,bmd->bnm', qh, kh,
                               preferred_element_type=jnp.float32)
                s = s - jnp.max(s, axis=-1, keepdims=True)
                e = jnp.exp(s)
                p = e * pl.reciprocal(jnp.sum(e, axis=-1, keepdims=True),
                                      approx=True)
                ctx = jnp.einsum('bnm,bmd->bnd', p, vh,
                                 preferred_element_type=jnp.float32)
                mh2 = mh2 + jnp.dot(ctx.reshape(M, qkv_dim), wc[lo:hi, :],
                                    preferred_element_type=jnp.float32)
            mh2 = mh2 + bc_ref[...]

            # ---- Add & InstanceNorm 1 (per-batch, per-channel over seq) ---
            add1 = x3 + mh2.reshape(Bt, N, D)
            mean1 = jnp.mean(add1, axis=1, keepdims=True)
            cent1 = add1 - mean1
            var1 = jnp.mean(cent1 * cent1, axis=1, keepdims=True)  # biased
            out1 = (cent1 * lax.rsqrt(var1 + eps)
                    * g1_ref[...] + beta1_ref[...])

            # ---- FeedForward on the flattened slab -------------------------
            o1 = out1.reshape(M, D)
            hid = jnp.maximum(
                jnp.dot(o1, w1_ref[...],
                        preferred_element_type=jnp.float32) + bf1_ref[...],
                0.0)
            ff = jnp.dot(hid, w2_ref[...],
                         preferred_element_type=jnp.float32) + bf2_ref[...]

            # ---- Add & InstanceNorm 2 --------------------------------------
            add2 = out1 + ff.reshape(Bt, N, D)
            mean2 = jnp.mean(add2, axis=1, keepdims=True)
            cent2 = add2 - mean2
            var2 = jnp.mean(cent2 * cent2, axis=1, keepdims=True)
            x3 = (cent2 * lax.rsqrt(var2 + eps)
                  * g2_ref[...] + beta2_ref[...])

        o_ref[...] = x3.astype(o_ref.dtype)

    return kernel


# ---------------------------------------------------------------------------
# Wrapper
# ---------------------------------------------------------------------------

def _rep_spec(shape):
    # Parameter block replicated to every grid step (block index always 0).
    return pl.BlockSpec(tuple(shape), lambda b, n=len(shape): (0,) * n)


def _pick_block_batch(B, N, target_rows=256, max_rows=2048):
    """Largest-enough divisor of B so the flattened M = Bt*N feeds the MXU."""
    divisors = [d for d in range(1, B + 1) if B % d == 0]
    ok = [d for d in divisors if d * N <= max_rows] or [1]
    for d in ok:
        if d * N >= target_rows:
            return d
    return ok[-1]


def _flatten_layer_params(lp, qkv_dim):
    scale = 1.0 / float(qkv_dim) ** 0.5
    # Fold the 1/sqrt(dk) attention scale into Wq / bq, and fuse Q/K/V into
    # one projection weight so the kernel issues a single slab matmul.
    wqkv = jnp.concatenate([lp["wq"] * scale, lp["wk"], lp["wv"]], axis=1)
    bqkv = jnp.concatenate([lp["bq"] * scale, lp["bk"], lp["bv"]], axis=1)
    return [
        wqkv, bqkv,
        lp["wc"], lp["bc"],
        lp["g1"], lp["beta1"],
        lp["w1"], lp["bf1"],
        lp["w2"], lp["bf2"],
        lp["g2"], lp["beta2"],
    ]


def tsp_encoder_forward(node_xy, params, head_num, qkv_dim, block_batch=None):
    B, N, _ = node_xy.shape
    D = params["w_emb"].shape[1]
    FF = params["layers"][0]["w1"].shape[1]
    HDK = head_num * qkv_dim
    num_layers = len(params["layers"])

    Bt = block_batch if block_batch is not None else _pick_block_batch(B, N)
    assert B % Bt == 0
    grid = (B // Bt,)

    kernel = make_fused_encoder_kernel(num_layers, head_num, qkv_dim)

    flat_params = [params["w_emb"], params["b_emb"]]
    for lp in params["layers"]:
        flat_params += _flatten_layer_params(lp, qkv_dim)

    in_specs = [pl.BlockSpec((Bt, N, 2), lambda b: (b, 0, 0))]
    in_specs += [_rep_spec(p.shape) for p in flat_params]
    out_specs = pl.BlockSpec((Bt, N, D), lambda b: (b, 0, 0))

    # Advisory cost estimate for XLA scheduling.
    param_bytes = int(sum(int(p.size) * 4 for p in flat_params))
    flops_per_b = 2 * N * 2 * D                                   # embedding
    flops_per_b += num_layers * (
        2 * N * D * (3 * HDK)                                     # fused QKV
        + 2 * head_num * 2 * N * N * qkv_dim                      # scores+ctx
        + 2 * N * HDK * D                                         # combine
        + 2 * N * D * FF + 2 * N * FF * D                         # FF
    )
    cost = pl.CostEstimate(
        flops=int(B * flops_per_b),
        transcendentals=int(B * num_layers * head_num * N * N),
        bytes_accessed=int(4 * (B * N * 2 + B * N * D) + param_bytes),
    )

    return pl.pallas_call(
        kernel,
        out_shape=jax.ShapeDtypeStruct((B, N, D), jnp.float32),
        grid=grid,
        in_specs=in_specs,
        out_specs=out_specs,
        compiler_params=pltpu.CompilerParams(
            dimension_semantics=("parallel",)
        ),
        cost_estimate=cost,
    )(node_xy, *flat_params)


# ---------------------------------------------------------------------------
# Pure-JAX reference (mirrors the PyTorch module) for a correctness check
# ---------------------------------------------------------------------------

def tsp_encoder_reference(node_xy, params, head_num, qkv_dim, eps=1e-5):
    x = node_xy @ params["w_emb"] + params["b_emb"]
    B, N, D = x.shape
    for lp in params["layers"]:
        q = x @ lp["wq"] + lp["bq"]
        k = x @ lp["wk"] + lp["bk"]
        v = x @ lp["wv"] + lp["bv"]

        def heads(t):
            return t.reshape(B, N, head_num, qkv_dim).transpose(0, 2, 1, 3)

        qh, kh, vh = heads(q), heads(k), heads(v)
        s = jnp.einsum('bhnd,bhmd->bhnm', qh, kh) / jnp.sqrt(
            jnp.float32(qkv_dim))
        w = jax.nn.softmax(s, axis=-1)
        ctx = jnp.einsum('bhnm,bhmd->bhnd', w, vh)
        ctx = ctx.transpose(0, 2, 1, 3).reshape(B, N, head_num * qkv_dim)
        mh = ctx @ lp["wc"] + lp["bc"]

        add1 = x + mh
        m1 = add1.mean(axis=1, keepdims=True)
        v1 = ((add1 - m1) ** 2).mean(axis=1, keepdims=True)
        out1 = (add1 - m1) / jnp.sqrt(v1 + eps) * lp["g1"] + lp["beta1"]

        hid = jax.nn.relu(out1 @ lp["w1"] + lp["bf1"])
        ff = hid @ lp["w2"] + lp["bf2"]

        add2 = out1 + ff
        m2 = add2.mean(axis=1, keepdims=True)
        v2 = ((add2 - m2) ** 2).mean(axis=1, keepdims=True)
        x = (add2 - m2) / jnp.sqrt(v2 + eps) * lp["g2"] + lp["beta2"]
    return x


# ---------------------------------------------------------------------------
# Deterministic parameter init (synthetic; not loading a checkpoint)
# ---------------------------------------------------------------------------

def init_params(key, embedding_dim, head_num, qkv_dim, ff_hidden_dim,
                num_layers):
    D, HDK, FF = embedding_dim, head_num * qkv_dim, ff_hidden_dim

    def nrm(k, shape, s=0.05):
        return (s * jax.random.normal(k, shape)).astype(jnp.float32)

    keys = jax.random.split(key, 2 + num_layers)
    params = {
        "w_emb": nrm(keys[0], (2, D)),
        "b_emb": nrm(keys[1], (1, D)),
        "layers": [],
    }
    for li in range(num_layers):
        lk = jax.random.split(keys[2 + li], 10)
        layer = {
            "wq": nrm(lk[0], (D, HDK)), "bq": nrm(lk[1], (1, HDK)),
            "wk": nrm(lk[2], (D, HDK)), "bk": nrm(lk[3], (1, HDK)),
            "wv": nrm(lk[4], (D, HDK)), "bv": nrm(lk[5], (1, HDK)),
            "wc": nrm(lk[6], (HDK, D)), "bc": nrm(lk[7], (1, D)),
            # InstanceNorm1d(affine=True) params: ones / zeros
            "g1": jnp.ones((1, D), jnp.float32),
            "beta1": jnp.zeros((1, D), jnp.float32),
            "w1": nrm(lk[8], (D, FF)), "bf1": jnp.zeros((1, FF), jnp.float32),
            "w2": nrm(lk[9], (FF, D)), "bf2": jnp.zeros((1, D), jnp.float32),
            "g2": jnp.ones((1, D), jnp.float32),
            "beta2": jnp.zeros((1, D), jnp.float32),
        }
        params["layers"].append(layer)
    return params


# ---------------------------------------------------------------------------
# Main
# ---------------------------------------------------------------------------

if __name__ == "__main__":
    EMBEDDING_DIM = 32
    HEAD_NUM = 4
    QKV_DIM = 8
    FF_HIDDEN_DIM = 64
    ENCODER_LAYER_NUM = 2
    BATCH = 2
    N_NODES = 8

    key = jax.random.PRNGKey(0)
    k_data, k_param = jax.random.split(key)

    node_xy = jax.random.uniform(
        k_data, (BATCH, N_NODES, 2), dtype=jnp.float32
    )
    params = init_params(
        k_param, EMBEDDING_DIM, HEAD_NUM, QKV_DIM, FF_HIDDEN_DIM,
        ENCODER_LAYER_NUM,
    )

    fwd = jax.jit(
        functools.partial(
            tsp_encoder_forward, head_num=HEAD_NUM, qkv_dim=QKV_DIM
        )
    )
    out = fwd(node_xy, params)
    jax.block_until_ready(out)

    assert out.shape == (BATCH, N_NODES, EMBEDDING_DIM)
    assert bool(jnp.all(jnp.isfinite(out)))

    # Correctness check against a pure-JAX reference (approx softmax
    # reciprocal -> loose tolerance on normalized O(1) outputs).
    ref = tsp_encoder_reference(node_xy, params, HEAD_NUM, QKV_DIM)
    max_err = float(jnp.max(jnp.abs(out - ref)))
    assert max_err < 5e-2, f"max abs error vs reference: {max_err}"

    print("KERNEL_OK")
</pallas_src>

<mosaic_0001>
module attributes {stable_mosaic.version = 11 : i64} {
  func.func @kernel(%arg0: i32, %arg1: memref<2x8x2xf32, #tpu.memory_space<vmem>>, %arg2: memref<2x32xf32, #tpu.memory_space<vmem>>, %arg3: memref<1x32xf32, #tpu.memory_space<vmem>>, %arg4: memref<32x96xf32, #tpu.memory_space<vmem>>, %arg5: memref<1x96xf32, #tpu.memory_space<vmem>>, %arg6: memref<32x32xf32, #tpu.memory_space<vmem>>, %arg7: memref<1x32xf32, #tpu.memory_space<vmem>>, %arg8: memref<1x32xf32, #tpu.memory_space<vmem>>, %arg9: memref<1x32xf32, #tpu.memory_space<vmem>>, %arg10: memref<32x64xf32, #tpu.memory_space<vmem>>, %arg11: memref<1x64xf32, #tpu.memory_space<vmem>>, %arg12: memref<64x32xf32, #tpu.memory_space<vmem>>, %arg13: memref<1x32xf32, #tpu.memory_space<vmem>>, %arg14: memref<1x32xf32, #tpu.memory_space<vmem>>, %arg15: memref<1x32xf32, #tpu.memory_space<vmem>>, %arg16: memref<32x96xf32, #tpu.memory_space<vmem>>, %arg17: memref<1x96xf32, #tpu.memory_space<vmem>>, %arg18: memref<32x32xf32, #tpu.memory_space<vmem>>, %arg19: memref<1x32xf32, #tpu.memory_space<vmem>>, %arg20: memref<1x32xf32, #tpu.memory_space<vmem>>, %arg21: memref<1x32xf32, #tpu.memory_space<vmem>>, %arg22: memref<32x64xf32, #tpu.memory_space<vmem>>, %arg23: memref<1x64xf32, #tpu.memory_space<vmem>>, %arg24: memref<64x32xf32, #tpu.memory_space<vmem>>, %arg25: memref<1x32xf32, #tpu.memory_space<vmem>>, %arg26: memref<1x32xf32, #tpu.memory_space<vmem>>, %arg27: memref<1x32xf32, #tpu.memory_space<vmem>>, %arg28: memref<2x8x32xf32, #tpu.memory_space<vmem>>) attributes {dimension_semantics = [#tpu.dimension_semantics<parallel>], iteration_bounds = array<i64: 1>, scalar_prefetch = 0 : i64, scratch_operands = 0 : i64, tpu.core_type = #tpu.core_type<tc>, window_params = [{transform_indices = @transform_0, window_bounds = array<i64: 2, 8, 2>}, {pipeline_mode = #tpu.pipeline_mode<synchronous>, transform_indices = @transform_1, window_bounds = array<i64: 2, 32>}, {pipeline_mode = #tpu.pipeline_mode<synchronous>, transform_indices = @transform_2, window_bounds = array<i64: 1, 32>}, {pipeline_mode = #tpu.pipeline_mode<synchronous>, transform_indices = @transform_3, window_bounds = array<i64: 32, 96>}, {pipeline_mode = #tpu.pipeline_mode<synchronous>, transform_indices = @transform_4, window_bounds = array<i64: 1, 96>}, {pipeline_mode = #tpu.pipeline_mode<synchronous>, transform_indices = @transform_5, window_bounds = array<i64: 32, 32>}, {pipeline_mode = #tpu.pipeline_mode<synchronous>, transform_indices = @transform_6, window_bounds = array<i64: 1, 32>}, {pipeline_mode = #tpu.pipeline_mode<synchronous>, transform_indices = @transform_7, window_bounds = array<i64: 1, 32>}, {pipeline_mode = #tpu.pipeline_mode<synchronous>, transform_indices = @transform_8, window_bounds = array<i64: 1, 32>}, {pipeline_mode = #tpu.pipeline_mode<synchronous>, transform_indices = @transform_9, window_bounds = array<i64: 32, 64>}, {pipeline_mode = #tpu.pipeline_mode<synchronous>, transform_indices = @transform_10, window_bounds = array<i64: 1, 64>}, {pipeline_mode = #tpu.pipeline_mode<synchronous>, transform_indices = @transform_11, window_bounds = array<i64: 64, 32>}, {pipeline_mode = #tpu.pipeline_mode<synchronous>, transform_indices = @transform_12, window_bounds = array<i64: 1, 32>}, {pipeline_mode = #tpu.pipeline_mode<synchronous>, transform_indices = @transform_13, window_bounds = array<i64: 1, 32>}, {pipeline_mode = #tpu.pipeline_mode<synchronous>, transform_indices = @transform_14, window_bounds = array<i64: 1, 32>}, {pipeline_mode = #tpu.pipeline_mode<synchronous>, transform_indices = @transform_15, window_bounds = array<i64: 32, 96>}, {pipeline_mode = #tpu.pipeline_mode<synchronous>, transform_indices = @transform_16, window_bounds = array<i64: 1, 96>}, {pipeline_mode = #tpu.pipeline_mode<synchronous>, transform_indices = @transform_17, window_bounds = array<i64: 32, 32>}, {pipeline_mode = #tpu.pipeline_mode<synchronous>, transform_indices = @transform_18, window_bounds = array<i64: 1, 32>}, {pipeline_mode = #tpu.pipeline_mode<synchronous>, transform_indices = @transform_19, window_bounds = array<i64: 1, 32>}, {pipeline_mode = #tpu.pipeline_mode<synchronous>, transform_indices = @transform_20, window_bounds = array<i64: 1, 32>}, {pipeline_mode = #tpu.pipeline_mode<synchronous>, transform_indices = @transform_21, window_bounds = array<i64: 32, 64>}, {pipeline_mode = #tpu.pipeline_mode<synchronous>, transform_indices = @transform_22, window_bounds = array<i64: 1, 64>}, {pipeline_mode = #tpu.pipeline_mode<synchronous>, transform_indices = @transform_23, window_bounds = array<i64: 64, 32>}, {pipeline_mode = #tpu.pipeline_mode<synchronous>, transform_indices = @transform_24, window_bounds = array<i64: 1, 32>}, {pipeline_mode = #tpu.pipeline_mode<synchronous>, transform_indices = @transform_25, window_bounds = array<i64: 1, 32>}, {pipeline_mode = #tpu.pipeline_mode<synchronous>, transform_indices = @transform_26, window_bounds = array<i64: 1, 32>}, {transform_indices = @transform_27, window_bounds = array<i64: 2, 8, 32>}]} {
    %c0 = arith.constant 0 : index
    %c0_0 = arith.constant 0 : index
    %c0_1 = arith.constant 0 : index
    %0 = vector.load %arg1[%c0, %c0_0, %c0_1] : memref<2x8x2xf32, #tpu.memory_space<vmem>>, vector<2x8x2xf32>
    %c0_2 = arith.constant 0 : index
    %c0_3 = arith.constant 0 : index
    %1 = vector.load %arg2[%c0_2, %c0_3] : memref<2x32xf32, #tpu.memory_space<vmem>>, vector<2x32xf32>
    %2 = vector.extract_strided_slice %0 {offsets = [0, 0, 0], sizes = [2, 8, 1], strides = [1, 1, 1]} : vector<2x8x2xf32> to vector<2x8x1xf32>
    %3 = vector.extract_strided_slice %1 {offsets = [0, 0], sizes = [1, 32], strides = [1, 1]} : vector<2x32xf32> to vector<1x32xf32>
    %4 = vector.shape_cast %3 : vector<1x32xf32> to vector<1x1x32xf32>
    %5 = vector.broadcast %2 : vector<2x8x1xf32> to vector<2x8x32xf32>
    %6 = vector.broadcast %4 : vector<1x1x32xf32> to vector<2x8x32xf32>
    %7 = arith.mulf %5, %6 : vector<2x8x32xf32>
    %8 = vector.extract_strided_slice %0 {offsets = [0, 0, 1], sizes = [2, 8, 1], strides = [1, 1, 1]} : vector<2x8x2xf32> to vector<2x8x1xf32>
    %9 = vector.extract_strided_slice %1 {offsets = [1, 0], sizes = [1, 32], strides = [1, 1]} : vector<2x32xf32> to vector<1x32xf32>
    %10 = vector.shape_cast %9 : vector<1x32xf32> to vector<1x1x32xf32>
    %11 = vector.broadcast %8 : vector<2x8x1xf32> to vector<2x8x32xf32>
    %12 = vector.broadcast %10 : vector<1x1x32xf32> to vector<2x8x32xf32>
    %13 = arith.mulf %11, %12 : vector<2x8x32xf32>
    %14 = arith.addf %7, %13 : vector<2x8x32xf32>
    %c0_4 = arith.constant 0 : index
    %c0_5 = arith.constant 0 : index
    %15 = vector.load %arg3[%c0_4, %c0_5] : memref<1x32xf32, #tpu.memory_space<vmem>>, vector<1x32xf32>
    %16 = vector.shape_cast %15 : vector<1x32xf32> to vector<1x1x32xf32>
    %17 = vector.broadcast %16 : vector<1x1x32xf32> to vector<2x8x32xf32>
    %18 = arith.addf %14, %17 : vector<2x8x32xf32>
    %19 = vector.shape_cast %18 : vector<2x8x32xf32> to vector<16x32xf32>
    %c0_6 = arith.constant 0 : index
    %c0_7 = arith.constant 0 : index
    %20 = vector.load %arg4[%c0_6, %c0_7] : memref<32x96xf32, #tpu.memory_space<vmem>>, vector<32x96xf32>
    %cst = arith.constant dense<0.000000e+00> : vector<16x96xf32>
    %21 = tpu.matmul %19, %20, %cst {dimension_numbers = #tpu.dot_dimension_numbers<[1], [0], [0], [1], [0, 0, 1, 1], [], []>} : vector<16x32xf32>, vector<32x96xf32>, vector<16x96xf32> -> vector<16x96xf32>
    %c0_8 = arith.constant 0 : index
    %c0_9 = arith.constant 0 : index
    %22 = vector.load %arg5[%c0_8, %c0_9] : memref<1x96xf32, #tpu.memory_space<vmem>>, vector<1x96xf32>
    %23 = vector.broadcast %22 : vector<1x96xf32> to vector<16x96xf32>
    %24 = arith.addf %21, %23 : vector<16x96xf32>
    %25 = vector.shape_cast %24 : vector<16x96xf32> to vector<2x8x96xf32>
    %c0_10 = arith.constant 0 : index
    %c0_11 = arith.constant 0 : index
    %26 = vector.load %arg6[%c0_10, %c0_11] : memref<32x32xf32, #tpu.memory_space<vmem>>, vector<32x32xf32>
    %cst_12 = arith.constant 0.000000e+00 : f32
    %27 = vector.broadcast %cst_12 : f32 to vector<16x32xf32>
    %28 = vector.extract_strided_slice %25 {offsets = [0, 0, 0], sizes = [2, 8, 8], strides = [1, 1, 1]} : vector<2x8x96xf32> to vector<2x8x8xf32>
    %29 = vector.extract_strided_slice %25 {offsets = [0, 0, 32], sizes = [2, 8, 8], strides = [1, 1, 1]} : vector<2x8x96xf32> to vector<2x8x8xf32>
    %30 = vector.extract_strided_slice %25 {offsets = [0, 0, 64], sizes = [2, 8, 8], strides = [1, 1, 1]} : vector<2x8x96xf32> to vector<2x8x8xf32>
    "tpu.trace_start"() <{level = 10 : i32, message = "bnd,bmd->bnm"}> : () -> ()
    %cst_13 = arith.constant dense<0.000000e+00> : vector<2x8x8xf32>
    %31 = tpu.matmul %28, %29, %cst_13 {dimension_numbers = #tpu.dot_dimension_numbers<[2], [2], [1], [1], [0, 0, 0, 1, 1, 1], [0], [0]>} : vector<2x8x8xf32>, vector<2x8x8xf32>, vector<2x8x8xf32> -> vector<2x8x8xf32>
    "tpu.trace_stop"() : () -> ()
    %cst_14 = arith.constant dense<0xFF800000> : vector<2x8xf32>
    %32 = vector.multi_reduction <maximumf>, %31, %cst_14 [2] : vector<2x8x8xf32> to vector<2x8xf32>
    %33 = vector.shape_cast %32 : vector<2x8xf32> to vector<2x8x1xf32>
    %34 = vector.broadcast %33 : vector<2x8x1xf32> to vector<2x8x8xf32>
    %35 = arith.subf %31, %34 : vector<2x8x8xf32>
    %36 = math.exp %35 : vector<2x8x8xf32>
    %cst_15 = arith.constant dense<0.000000e+00> : vector<2x8xf32>
    %37 = vector.multi_reduction <add>, %36, %cst_15 [2] : vector<2x8x8xf32> to vector<2x8xf32>
    %38 = vector.shape_cast %37 : vector<2x8xf32> to vector<2x8x1xf32>
    %39 = tpu.reciprocal %38 {approx = true} : vector<2x8x1xf32> -> vector<2x8x1xf32>
    %40 = vector.broadcast %39 : vector<2x8x1xf32> to vector<2x8x8xf32>
    %41 = arith.mulf %36, %40 : vector<2x8x8xf32>
    "tpu.trace_start"() <{level = 10 : i32, message = "bnm,bmd->bnd"}> : () -> ()
    %cst_16 = arith.constant dense<0.000000e+00> : vector<2x8x8xf32>
    %42 = tpu.matmul %41, %30, %cst_16 {dimension_numbers = #tpu.dot_dimension_numbers<[2], [1], [1], [2], [0, 0, 0, 1, 1, 2], [0], [0]>} : vector<2x8x8xf32>, vector<2x8x8xf32>, vector<2x8x8xf32> -> vector<2x8x8xf32>
    "tpu.trace_stop"() : () -> ()
    %43 = vector.shape_cast %42 : vector<2x8x8xf32> to vector<16x8xf32>
    %44 = vector.extract_strided_slice %26 {offsets = [0, 0], sizes = [8, 32], strides = [1, 1]} : vector<32x32xf32> to vector<8x32xf32>
    %cst_17 = arith.constant dense<0.000000e+00> : vector<16x32xf32>
    %45 = tpu.matmul %43, %44, %cst_17 {dimension_numbers = #tpu.dot_dimension_numbers<[1], [0], [0], [1], [0, 0, 1, 1], [], []>} : vector<16x8xf32>, vector<8x32xf32>, vector<16x32xf32> -> vector<16x32xf32>
    %46 = arith.addf %27, %45 : vector<16x32xf32>
    %47 = vector.extract_strided_slice %25 {offsets = [0, 0, 8], sizes = [2, 8, 8], strides = [1, 1, 1]} : vector<2x8x96xf32> to vector<2x8x8xf32>
    %48 = vector.extract_strided_slice %25 {offsets = [0, 0, 40], sizes = [2, 8, 8], strides = [1, 1, 1]} : vector<2x8x96xf32> to vector<2x8x8xf32>
    %49 = vector.extract_strided_slice %25 {offsets = [0, 0, 72], sizes = [2, 8, 8], strides = [1, 1, 1]} : vector<2x8x96xf32> to vector<2x8x8xf32>
    "tpu.trace_start"() <{level = 10 : i32, message = "bnd,bmd->bnm"}> : () -> ()
    %cst_18 = arith.constant dense<0.000000e+00> : vector<2x8x8xf32>
    %50 = tpu.matmul %47, %48, %cst_18 {dimension_numbers = #tpu.dot_dimension_numbers<[2], [2], [1], [1], [0, 0, 0, 1, 1, 1], [0], [0]>} : vector<2x8x8xf32>, vector<2x8x8xf32>, vector<2x8x8xf32> -> vector<2x8x8xf32>
    "tpu.trace_stop"() : () -> ()
    %cst_19 = arith.constant dense<0xFF800000> : vector<2x8xf32>
    %51 = vector.multi_reduction <maximumf>, %50, %cst_19 [2] : vector<2x8x8xf32> to vector<2x8xf32>
    %52 = vector.shape_cast %51 : vector<2x8xf32> to vector<2x8x1xf32>
    %53 = vector.broadcast %52 : vector<2x8x1xf32> to vector<2x8x8xf32>
    %54 = arith.subf %50, %53 : vector<2x8x8xf32>
    %55 = math.exp %54 : vector<2x8x8xf32>
    %cst_20 = arith.constant dense<0.000000e+00> : vector<2x8xf32>
    %56 = vector.multi_reduction <add>, %55, %cst_20 [2] : vector<2x8x8xf32> to vector<2x8xf32>
    %57 = vector.shape_cast %56 : vector<2x8xf32> to vector<2x8x1xf32>
    %58 = tpu.reciprocal %57 {approx = true} : vector<2x8x1xf32> -> vector<2x8x1xf32>
    %59 = vector.broadcast %58 : vector<2x8x1xf32> to vector<2x8x8xf32>
    %60 = arith.mulf %55, %59 : vector<2x8x8xf32>
    "tpu.trace_start"() <{level = 10 : i32, message = "bnm,bmd->bnd"}> : () -> ()
    %cst_21 = arith.constant dense<0.000000e+00> : vector<2x8x8xf32>
    %61 = tpu.matmul %60, %49, %cst_21 {dimension_numbers = #tpu.dot_dimension_numbers<[2], [1], [1], [2], [0, 0, 0, 1, 1, 2], [0], [0]>} : vector<2x8x8xf32>, vector<2x8x8xf32>, vector<2x8x8xf32> -> vector<2x8x8xf32>
    "tpu.trace_stop"() : () -> ()
    %62 = vector.shape_cast %61 : vector<2x8x8xf32> to vector<16x8xf32>
    %63 = vector.extract_strided_slice %26 {offsets = [8, 0], sizes = [8, 32], strides = [1, 1]} : vector<32x32xf32> to vector<8x32xf32>
    %cst_22 = arith.constant dense<0.000000e+00> : vector<16x32xf32>
    %64 = tpu.matmul %62, %63, %cst_22 {dimension_numbers = #tpu.dot_dimension_numbers<[1], [0], [0], [1], [0, 0, 1, 1], [], []>} : vector<16x8xf32>, vector<8x32xf32>, vector<16x32xf32> -> vector<16x32xf32>
    %65 = arith.addf %46, %64 : vector<16x32xf32>
    %66 = vector.extract_strided_slice %25 {offsets = [0, 0, 16], sizes = [2, 8, 8], strides = [1, 1, 1]} : vector<2x8x96xf32> to vector<2x8x8xf32>
    %67 = vector.extract_strided_slice %25 {offsets = [0, 0, 48], sizes = [2, 8, 8], strides = [1, 1, 1]} : vector<2x8x96xf32> to vector<2x8x8xf32>
    %68 = vector.extract_strided_slice %25 {offsets = [0, 0, 80], sizes = [2, 8, 8], strides = [1, 1, 1]} : vector<2x8x96xf32> to vector<2x8x8xf32>
    "tpu.trace_start"() <{level = 10 : i32, message = "bnd,bmd->bnm"}> : () -> ()
    %cst_23 = arith.constant dense<0.000000e+00> : vector<2x8x8xf32>
    %69 = tpu.matmul %66, %67, %cst_23 {dimension_numbers = #tpu.dot_dimension_numbers<[2], [2], [1], [1], [0, 0, 0, 1, 1, 1], [0], [0]>} : vector<2x8x8xf32>, vector<2x8x8xf32>, vector<2x8x8xf32> -> vector<2x8x8xf32>
    "tpu.trace_stop"() : () -> ()
    %cst_24 = arith.constant dense<0xFF800000> : vector<2x8xf32>
    %70 = vector.multi_reduction <maximumf>, %69, %cst_24 [2] : vector<2x8x8xf32> to vector<2x8xf32>
    %71 = vector.shape_cast %70 : vector<2x8xf32> to vector<2x8x1xf32>
    %72 = vector.broadcast %71 : vector<2x8x1xf32> to vector<2x8x8xf32>
    %73 = arith.subf %69, %72 : vector<2x8x8xf32>
    %74 = math.exp %73 : vector<2x8x8xf32>
    %cst_25 = arith.constant dense<0.000000e+00> : vector<2x8xf32>
    %75 = vector.multi_reduction <add>, %74, %cst_25 [2] : vector<2x8x8xf32> to vector<2x8xf32>
    %76 = vector.shape_cast %75 : vector<2x8xf32> to vector<2x8x1xf32>
    %77 = tpu.reciprocal %76 {approx = true} : vector<2x8x1xf32> -> vector<2x8x1xf32>
    %78 = vector.broadcast %77 : vector<2x8x1xf32> to vector<2x8x8xf32>
    %79 = arith.mulf %74, %78 : vector<2x8x8xf32>
    "tpu.trace_start"() <{level = 10 : i32, message = "bnm,bmd->bnd"}> : () -> ()
    %cst_26 = arith.constant dense<0.000000e+00> : vector<2x8x8xf32>
    %80 = tpu.matmul %79, %68, %cst_26 {dimension_numbers = #tpu.dot_dimension_numbers<[2], [1], [1], [2], [0, 0, 0, 1, 1, 2], [0], [0]>} : vector<2x8x8xf32>, vector<2x8x8xf32>, vector<2x8x8xf32> -> vector<2x8x8xf32>
    "tpu.trace_stop"() : () -> ()
    %81 = vector.shape_cast %80 : vector<2x8x8xf32> to vector<16x8xf32>
    %82 = vector.extract_strided_slice %26 {offsets = [16, 0], sizes = [8, 32], strides = [1, 1]} : vector<32x32xf32> to vector<8x32xf32>
    %cst_27 = arith.constant dense<0.000000e+00> : vector<16x32xf32>
    %83 = tpu.matmul %81, %82, %cst_27 {dimension_numbers = #tpu.dot_dimension_numbers<[1], [0], [0], [1], [0, 0, 1, 1], [], []>} : vector<16x8xf32>, vector<8x32xf32>, vector<16x32xf32> -> vector<16x32xf32>
    %84 = arith.addf %65, %83 : vector<16x32xf32>
    %85 = vector.extract_strided_slice %25 {offsets = [0, 0, 24], sizes = [2, 8, 8], strides = [1, 1, 1]} : vector<2x8x96xf32> to vector<2x8x8xf32>
    %86 = vector.extract_strided_slice %25 {offsets = [0, 0, 56], sizes = [2, 8, 8], strides = [1, 1, 1]} : vector<2x8x96xf32> to vector<2x8x8xf32>
    %87 = vector.extract_strided_slice %25 {offsets = [0, 0, 88], sizes = [2, 8, 8], strides = [1, 1, 1]} : vector<2x8x96xf32> to vector<2x8x8xf32>
    "tpu.trace_start"() <{level = 10 : i32, message = "bnd,bmd->bnm"}> : () -> ()
    %cst_28 = arith.constant dense<0.000000e+00> : vector<2x8x8xf32>
    %88 = tpu.matmul %85, %86, %cst_28 {dimension_numbers = #tpu.dot_dimension_numbers<[2], [2], [1], [1], [0, 0, 0, 1, 1, 1], [0], [0]>} : vector<2x8x8xf32>, vector<2x8x8xf32>, vector<2x8x8xf32> -> vector<2x8x8xf32>
    "tpu.trace_stop"() : () -> ()
    %cst_29 = arith.constant dense<0xFF800000> : vector<2x8xf32>
    %89 = vector.multi_reduction <maximumf>, %88, %cst_29 [2] : vector<2x8x8xf32> to vector<2x8xf32>
    %90 = vector.shape_cast %89 : vector<2x8xf32> to vector<2x8x1xf32>
    %91 = vector.broadcast %90 : vector<2x8x1xf32> to vector<2x8x8xf32>
    %92 = arith.subf %88, %91 : vector<2x8x8xf32>
    %93 = math.exp %92 : vector<2x8x8xf32>
    %cst_30 = arith.constant dense<0.000000e+00> : vector<2x8xf32>
    %94 = vector.multi_reduction <add>, %93, %cst_30 [2] : vector<2x8x8xf32> to vector<2x8xf32>
    %95 = vector.shape_cast %94 : vector<2x8xf32> to vector<2x8x1xf32>
    %96 = tpu.reciprocal %95 {approx = true} : vector<2x8x1xf32> -> vector<2x8x1xf32>
    %97 = vector.broadcast %96 : vector<2x8x1xf32> to vector<2x8x8xf32>
    %98 = arith.mulf %93, %97 : vector<2x8x8xf32>
    "tpu.trace_start"() <{level = 10 : i32, message = "bnm,bmd->bnd"}> : () -> ()
    %cst_31 = arith.constant dense<0.000000e+00> : vector<2x8x8xf32>
    %99 = tpu.matmul %98, %87, %cst_31 {dimension_numbers = #tpu.dot_dimension_numbers<[2], [1], [1], [2], [0, 0, 0, 1, 1, 2], [0], [0]>} : vector<2x8x8xf32>, vector<2x8x8xf32>, vector<2x8x8xf32> -> vector<2x8x8xf32>
    "tpu.trace_stop"() : () -> ()
    %100 = vector.shape_cast %99 : vector<2x8x8xf32> to vector<16x8xf32>
    %101 = vector.extract_strided_slice %26 {offsets = [24, 0], sizes = [8, 32], strides = [1, 1]} : vector<32x32xf32> to vector<8x32xf32>
    %cst_32 = arith.constant dense<0.000000e+00> : vector<16x32xf32>
    %102 = tpu.matmul %100, %101, %cst_32 {dimension_numbers = #tpu.dot_dimension_numbers<[1], [0], [0], [1], [0, 0, 1, 1], [], []>} : vector<16x8xf32>, vector<8x32xf32>, vector<16x32xf32> -> vector<16x32xf32>
    %103 = arith.addf %84, %102 : vector<16x32xf32>
    %c0_33 = arith.constant 0 : index
    %c0_34 = arith.constant 0 : index
    %104 = vector.load %arg7[%c0_33, %c0_34] : memref<1x32xf32, #tpu.memory_space<vmem>>, vector<1x32xf32>
    %105 = vector.broadcast %104 : vector<1x32xf32> to vector<16x32xf32>
    %106 = arith.addf %103, %105 : vector<16x32xf32>
    %107 = vector.shape_cast %106 : vector<16x32xf32> to vector<2x8x32xf32>
    %108 = arith.addf %18, %107 : vector<2x8x32xf32>
    %cst_35 = arith.constant dense<0.000000e+00> : vector<2x32xf32>
    %109 = vector.multi_reduction <add>, %108, %cst_35 [1] : vector<2x8x32xf32> to vector<2x32xf32>
    %110 = vector.shape_cast %109 : vector<2x32xf32> to vector<2x1x32xf32>
    %cst_36 = arith.constant 8.000000e+00 : f32
    %111 = vector.broadcast %cst_36 : f32 to vector<2x1x32xf32>
    %112 = arith.divf %110, %111 : vector<2x1x32xf32>
    %113 = vector.broadcast %112 : vector<2x1x32xf32> to vector<2x8x32xf32>
    %114 = arith.subf %108, %113 : vector<2x8x32xf32>
    %115 = arith.mulf %114, %114 : vector<2x8x32xf32>
    %cst_37 = arith.constant dense<0.000000e+00> : vector<2x32xf32>
    %116 = vector.multi_reduction <add>, %115, %cst_37 [1] : vector<2x8x32xf32> to vector<2x32xf32>
    %117 = vector.shape_cast %116 : vector<2x32xf32> to vector<2x1x32xf32>
    %cst_38 = arith.constant 8.000000e+00 : f32
    %118 = vector.broadcast %cst_38 : f32 to vector<2x1x32xf32>
    %119 = arith.divf %117, %118 : vector<2x1x32xf32>
    %cst_39 = arith.constant 9.99999974E-6 : f32
    %120 = vector.broadcast %cst_39 : f32 to vector<2x1x32xf32>
    %121 = arith.addf %119, %120 : vector<2x1x32xf32>
    %122 = math.rsqrt %121 : vector<2x1x32xf32>
    %123 = vector.broadcast %122 : vector<2x1x32xf32> to vector<2x8x32xf32>
    %124 = arith.mulf %114, %123 : vector<2x8x32xf32>
    %c0_40 = arith.constant 0 : index
    %c0_41 = arith.constant 0 : index
    %125 = vector.load %arg8[%c0_40, %c0_41] : memref<1x32xf32, #tpu.memory_space<vmem>>, vector<1x32xf32>
    %126 = vector.shape_cast %125 : vector<1x32xf32> to vector<1x1x32xf32>
    %127 = vector.broadcast %126 : vector<1x1x32xf32> to vector<2x8x32xf32>
    %128 = arith.mulf %124, %127 : vector<2x8x32xf32>
    %c0_42 = arith.constant 0 : index
    %c0_43 = arith.constant 0 : index
    %129 = vector.load %arg9[%c0_42, %c0_43] : memref<1x32xf32, #tpu.memory_space<vmem>>, vector<1x32xf32>
    %130 = vector.shape_cast %129 : vector<1x32xf32> to vector<1x1x32xf32>
    %131 = vector.broadcast %130 : vector<1x1x32xf32> to vector<2x8x32xf32>
    %132 = arith.addf %128, %131 : vector<2x8x32xf32>
    %133 = vector.shape_cast %132 : vector<2x8x32xf32> to vector<16x32xf32>
    %c0_44 = arith.constant 0 : index
    %c0_45 = arith.constant 0 : index
    %134 = vector.load %arg10[%c0_44, %c0_45] : memref<32x64xf32, #tpu.memory_space<vmem>>, vector<32x64xf32>
    %cst_46 = arith.constant dense<0.000000e+00> : vector<16x64xf32>
    %135 = tpu.matmul %133, %134, %cst_46 {dimension_numbers = #tpu.dot_dimension_numbers<[1], [0], [0], [1], [0, 0, 1, 1], [], []>} : vector<16x32xf32>, vector<32x64xf32>, vector<16x64xf32> -> vector<16x64xf32>
    %c0_47 = arith.constant 0 : index
    %c0_48 = arith.constant 0 : index
    %136 = vector.load %arg11[%c0_47, %c0_48] : memref<1x64xf32, #tpu.memory_space<vmem>>, vector<1x64xf32>
    %137 = vector.broadcast %136 : vector<1x64xf32> to vector<16x64xf32>
    %138 = arith.addf %135, %137 : vector<16x64xf32>
    %cst_49 = arith.constant 0.000000e+00 : f32
    %139 = vector.broadcast %cst_49 : f32 to vector<16x64xf32>
    %140 = arith.maximumf %138, %139 : vector<16x64xf32>
    %c0_50 = arith.constant 0 : index
    %c0_51 = arith.constant 0 : index
    %141 = vector.load %arg12[%c0_50, %c0_51] : memref<64x32xf32, #tpu.memory_space<vmem>>, vector<64x32xf32>
    %cst_52 = arith.constant dense<0.000000e+00> : vector<16x32xf32>
    %142 = tpu.matmul %140, %141, %cst_52 {dimension_numbers = #tpu.dot_dimension_numbers<[1], [0], [0], [1], [0, 0, 1, 1], [], []>} : vector<16x64xf32>, vector<64x32xf32>, vector<16x32xf32> -> vector<16x32xf32>
    %c0_53 = arith.constant 0 : index
    %c0_54 = arith.constant 0 : index
    %143 = vector.load %arg13[%c0_53, %c0_54] : memref<1x32xf32, #tpu.memory_space<vmem>>, vector<1x32xf32>
    %144 = vector.broadcast %143 : vector<1x32xf32> to vector<16x32xf32>
    %145 = arith.addf %142, %144 : vector<16x32xf32>
    %146 = vector.shape_cast %145 : vector<16x32xf32> to vector<2x8x32xf32>
    %147 = arith.addf %132, %146 : vector<2x8x32xf32>
    %cst_55 = arith.constant dense<0.000000e+00> : vector<2x32xf32>
    %148 = vector.multi_reduction <add>, %147, %cst_55 [1] : vector<2x8x32xf32> to vector<2x32xf32>
    %149 = vector.shape_cast %148 : vector<2x32xf32> to vector<2x1x32xf32>
    %cst_56 = arith.constant 8.000000e+00 : f32
    %150 = vector.broadcast %cst_56 : f32 to vector<2x1x32xf32>
    %151 = arith.divf %149, %150 : vector<2x1x32xf32>
    %152 = vector.broadcast %151 : vector<2x1x32xf32> to vector<2x8x32xf32>
    %153 = arith.subf %147, %152 : vector<2x8x32xf32>
    %154 = arith.mulf %153, %153 : vector<2x8x32xf32>
    %cst_57 = arith.constant dense<0.000000e+00> : vector<2x32xf32>
    %155 = vector.multi_reduction <add>, %154, %cst_57 [1] : vector<2x8x32xf32> to vector<2x32xf32>
    %156 = vector.shape_cast %155 : vector<2x32xf32> to vector<2x1x32xf32>
    %cst_58 = arith.constant 8.000000e+00 : f32
    %157 = vector.broadcast %cst_58 : f32 to vector<2x1x32xf32>
    %158 = arith.divf %156, %157 : vector<2x1x32xf32>
    %cst_59 = arith.constant 9.99999974E-6 : f32
    %159 = vector.broadcast %cst_59 : f32 to vector<2x1x32xf32>
    %160 = arith.addf %158, %159 : vector<2x1x32xf32>
    %161 = math.rsqrt %160 : vector<2x1x32xf32>
    %162 = vector.broadcast %161 : vector<2x1x32xf32> to vector<2x8x32xf32>
    %163 = arith.mulf %153, %162 : vector<2x8x32xf32>
    %c0_60 = arith.constant 0 : index
    %c0_61 = arith.constant 0 : index
    %164 = vector.load %arg14[%c0_60, %c0_61] : memref<1x32xf32, #tpu.memory_space<vmem>>, vector<1x32xf32>
    %165 = vector.shape_cast %164 : vector<1x32xf32> to vector<1x1x32xf32>
    %166 = vector.broadcast %165 : vector<1x1x32xf32> to vector<2x8x32xf32>
    %167 = arith.mulf %163, %166 : vector<2x8x32xf32>
    %c0_62 = arith.constant 0 : index
    %c0_63 = arith.constant 0 : index
    %168 = vector.load %arg15[%c0_62, %c0_63] : memref<1x32xf32, #tpu.memory_space<vmem>>, vector<1x32xf32>
    %169 = vector.shape_cast %168 : vector<1x32xf32> to vector<1x1x32xf32>
    %170 = vector.broadcast %169 : vector<1x1x32xf32> to vector<2x8x32xf32>
    %171 = arith.addf %167, %170 : vector<2x8x32xf32>
    %172 = vector.shape_cast %171 : vector<2x8x32xf32> to vector<16x32xf32>
    %c0_64 = arith.constant 0 : index
    %c0_65 = arith.constant 0 : index
    %173 = vector.load %arg16[%c0_64, %c0_65] : memref<32x96xf32, #tpu.memory_space<vmem>>, vector<32x96xf32>
    %cst_66 = arith.constant dense<0.000000e+00> : vector<16x96xf32>
    %174 = tpu.matmul %172, %173, %cst_66 {dimension_numbers = #tpu.dot_dimension_numbers<[1], [0], [0], [1], [0, 0, 1, 1], [], []>} : vector<16x32xf32>, vector<32x96xf32>, vector<16x96xf32> -> vector<16x96xf32>
    %c0_67 = arith.constant 0 : index
    %c0_68 = arith.constant 0 : index
    %175 = vector.load %arg17[%c0_67, %c0_68] : memref<1x96xf32, #tpu.memory_space<vmem>>, vector<1x96xf32>
    %176 = vector.broadcast %175 : vector<1x96xf32> to vector<16x96xf32>
    %177 = arith.addf %174, %176 : vector<16x96xf32>
    %178 = vector.shape_cast %177 : vector<16x96xf32> to vector<2x8x96xf32>
    %c0_69 = arith.constant 0 : index
    %c0_70 = arith.constant 0 : index
    %179 = vector.load %arg18[%c0_69, %c0_70] : memref<32x32xf32, #tpu.memory_space<vmem>>, vector<32x32xf32>
    %cst_71 = arith.constant 0.000000e+00 : f32
    %180 = vector.broadcast %cst_71 : f32 to vector<16x32xf32>
    %181 = vector.extract_strided_slice %178 {offsets = [0, 0, 0], sizes = [2, 8, 8], strides = [1, 1, 1]} : vector<2x8x96xf32> to vector<2x8x8xf32>
    %182 = vector.extract_strided_slice %178 {offsets = [0, 0, 32], sizes = [2, 8, 8], strides = [1, 1, 1]} : vector<2x8x96xf32> to vector<2x8x8xf32>
    %183 = vector.extract_strided_slice %178 {offsets = [0, 0, 64], sizes = [2, 8, 8], strides = [1, 1, 1]} : vector<2x8x96xf32> to vector<2x8x8xf32>
    "tpu.trace_start"() <{level = 10 : i32, message = "bnd,bmd->bnm"}> : () -> ()
    %cst_72 = arith.constant dense<0.000000e+00> : vector<2x8x8xf32>
    %184 = tpu.matmul %181, %182, %cst_72 {dimension_numbers = #tpu.dot_dimension_numbers<[2], [2], [1], [1], [0, 0, 0, 1, 1, 1], [0], [0]>} : vector<2x8x8xf32>, vector<2x8x8xf32>, vector<2x8x8xf32> -> vector<2x8x8xf32>
    "tpu.trace_stop"() : () -> ()
    %cst_73 = arith.constant dense<0xFF800000> : vector<2x8xf32>
    %185 = vector.multi_reduction <maximumf>, %184, %cst_73 [2] : vector<2x8x8xf32> to vector<2x8xf32>
    %186 = vector.shape_cast %185 : vector<2x8xf32> to vector<2x8x1xf32>
    %187 = vector.broadcast %186 : vector<2x8x1xf32> to vector<2x8x8xf32>
    %188 = arith.subf %184, %187 : vector<2x8x8xf32>
    %189 = math.exp %188 : vector<2x8x8xf32>
    %cst_74 = arith.constant dense<0.000000e+00> : vector<2x8xf32>
    %190 = vector.multi_reduction <add>, %189, %cst_74 [2] : vector<2x8x8xf32> to vector<2x8xf32>
    %191 = vector.shape_cast %190 : vector<2x8xf32> to vector<2x8x1xf32>
    %192 = tpu.reciprocal %191 {approx = true} : vector<2x8x1xf32> -> vector<2x8x1xf32>
    %193 = vector.broadcast %192 : vector<2x8x1xf32> to vector<2x8x8xf32>
    %194 = arith.mulf %189, %193 : vector<2x8x8xf32>
    "tpu.trace_start"() <{level = 10 : i32, message = "bnm,bmd->bnd"}> : () -> ()
    %cst_75 = arith.constant dense<0.000000e+00> : vector<2x8x8xf32>
    %195 = tpu.matmul %194, %183, %cst_75 {dimension_numbers = #tpu.dot_dimension_numbers<[2], [1], [1], [2], [0, 0, 0, 1, 1, 2], [0], [0]>} : vector<2x8x8xf32>, vector<2x8x8xf32>, vector<2x8x8xf32> -> vector<2x8x8xf32>
    "tpu.trace_stop"() : () -> ()
    %196 = vector.shape_cast %195 : vector<2x8x8xf32> to vector<16x8xf32>
    %197 = vector.extract_strided_slice %179 {offsets = [0, 0], sizes = [8, 32], strides = [1, 1]} : vector<32x32xf32> to vector<8x32xf32>
    %cst_76 = arith.constant dense<0.000000e+00> : vector<16x32xf32>
    %198 = tpu.matmul %196, %197, %cst_76 {dimension_numbers = #tpu.dot_dimension_numbers<[1], [0], [0], [1], [0, 0, 1, 1], [], []>} : vector<16x8xf32>, vector<8x32xf32>, vector<16x32xf32> -> vector<16x32xf32>
    %199 = arith.addf %180, %198 : vector<16x32xf32>
    %200 = vector.extract_strided_slice %178 {offsets = [0, 0, 8], sizes = [2, 8, 8], strides = [1, 1, 1]} : vector<2x8x96xf32> to vector<2x8x8xf32>
    %201 = vector.extract_strided_slice %178 {offsets = [0, 0, 40], sizes = [2, 8, 8], strides = [1, 1, 1]} : vector<2x8x96xf32> to vector<2x8x8xf32>
    %202 = vector.extract_strided_slice %178 {offsets = [0, 0, 72], sizes = [2, 8, 8], strides = [1, 1, 1]} : vector<2x8x96xf32> to vector<2x8x8xf32>
    "tpu.trace_start"() <{level = 10 : i32, message = "bnd,bmd->bnm"}> : () -> ()
    %cst_77 = arith.constant dense<0.000000e+00> : vector<2x8x8xf32>
    %203 = tpu.matmul %200, %201, %cst_77 {dimension_numbers = #tpu.dot_dimension_numbers<[2], [2], [1], [1], [0, 0, 0, 1, 1, 1], [0], [0]>} : vector<2x8x8xf32>, vector<2x8x8xf32>, vector<2x8x8xf32> -> vector<2x8x8xf32>
    "tpu.trace_stop"() : () -> ()
    %cst_78 = arith.constant dense<0xFF800000> : vector<2x8xf32>
    %204 = vector.multi_reduction <maximumf>, %203, %cst_78 [2] : vector<2x8x8xf32> to vector<2x8xf32>
    %205 = vector.shape_cast %204 : vector<2x8xf32> to vector<2x8x1xf32>
    %206 = vector.broadcast %205 : vector<2x8x1xf32> to vector<2x8x8xf32>
    %207 = arith.subf %203, %206 : vector<2x8x8xf32>
    %208 = math.exp %207 : vector<2x8x8xf32>
    %cst_79 = arith.constant dense<0.000000e+00> : vector<2x8xf32>
    %209 = vector.multi_reduction <add>, %208, %cst_79 [2] : vector<2x8x8xf32> to vector<2x8xf32>
    %210 = vector.shape_cast %209 : vector<2x8xf32> to vector<2x8x1xf32>
    %211 = tpu.reciprocal %210 {approx = true} : vector<2x8x1xf32> -> vector<2x8x1xf32>
    %212 = vector.broadcast %211 : vector<2x8x1xf32> to vector<2x8x8xf32>
    %213 = arith.mulf %208, %212 : vector<2x8x8xf32>
    "tpu.trace_start"() <{level = 10 : i32, message = "bnm,bmd->bnd"}> : () -> ()
    %cst_80 = arith.constant dense<0.000000e+00> : vector<2x8x8xf32>
    %214 = tpu.matmul %213, %202, %cst_80 {dimension_numbers = #tpu.dot_dimension_numbers<[2], [1], [1], [2], [0, 0, 0, 1, 1, 2], [0], [0]>} : vector<2x8x8xf32>, vector<2x8x8xf32>, vector<2x8x8xf32> -> vector<2x8x8xf32>
    "tpu.trace_stop"() : () -> ()
    %215 = vector.shape_cast %214 : vector<2x8x8xf32> to vector<16x8xf32>
    %216 = vector.extract_strided_slice %179 {offsets = [8, 0], sizes = [8, 32], strides = [1, 1]} : vector<32x32xf32> to vector<8x32xf32>
    %cst_81 = arith.constant dense<0.000000e+00> : vector<16x32xf32>
    %217 = tpu.matmul %215, %216, %cst_81 {dimension_numbers = #tpu.dot_dimension_numbers<[1], [0], [0], [1], [0, 0, 1, 1], [], []>} : vector<16x8xf32>, vector<8x32xf32>, vector<16x32xf32> -> vector<16x32xf32>
    %218 = arith.addf %199, %217 : vector<16x32xf32>
    %219 = vector.extract_strided_slice %178 {offsets = [0, 0, 16], sizes = [2, 8, 8], strides = [1, 1, 1]} : vector<2x8x96xf32> to vector<2x8x8xf32>
    %220 = vector.extract_strided_slice %178 {offsets = [0, 0, 48], sizes = [2, 8, 8], strides = [1, 1, 1]} : vector<2x8x96xf32> to vector<2x8x8xf32>
    %221 = vector.extract_strided_slice %178 {offsets = [0, 0, 80], sizes = [2, 8, 8], strides = [1, 1, 1]} : vector<2x8x96xf32> to vector<2x8x8xf32>
    "tpu.trace_start"() <{level = 10 : i32, message = "bnd,bmd->bnm"}> : () -> ()
    %cst_82 = arith.constant dense<0.000000e+00> : vector<2x8x8xf32>
    %222 = tpu.matmul %219, %220, %cst_82 {dimension_numbers = #tpu.dot_dimension_numbers<[2], [2], [1], [1], [0, 0, 0, 1, 1, 1], [0], [0]>} : vector<2x8x8xf32>, vector<2x8x8xf32>, vector<2x8x8xf32> -> vector<2x8x8xf32>
    "tpu.trace_stop"() : () -> ()
    %cst_83 = arith.constant dense<0xFF800000> : vector<2x8xf32>
    %223 = vector.multi_reduction <maximumf>, %222, %cst_83 [2] : vector<2x8x8xf32> to vector<2x8xf32>
    %224 = vector.shape_cast %223 : vector<2x8xf32> to vector<2x8x1xf32>
    %225 = vector.broadcast %224 : vector<2x8x1xf32> to vector<2x8x8xf32>
    %226 = arith.subf %222, %225 : vector<2x8x8xf32>
    %227 = math.exp %226 : vector<2x8x8xf32>
    %cst_84 = arith.constant dense<0.000000e+00> : vector<2x8xf32>
    %228 = vector.multi_reduction <add>, %227, %cst_84 [2] : vector<2x8x8xf32> to vector<2x8xf32>
    %229 = vector.shape_cast %228 : vector<2x8xf32> to vector<2x8x1xf32>
    %230 = tpu.reciprocal %229 {approx = true} : vector<2x8x1xf32> -> vector<2x8x1xf32>
    %231 = vector.broadcast %230 : vector<2x8x1xf32> to vector<2x8x8xf32>
    %232 = arith.mulf %227, %231 : vector<2x8x8xf32>
    "tpu.trace_start"() <{level = 10 : i32, message = "bnm,bmd->bnd"}> : () -> ()
    %cst_85 = arith.constant dense<0.000000e+00> : vector<2x8x8xf32>
    %233 = tpu.matmul %232, %221, %cst_85 {dimension_numbers = #tpu.dot_dimension_numbers<[2], [1], [1], [2], [0, 0, 0, 1, 1, 2], [0], [0]>} : vector<2x8x8xf32>, vector<2x8x8xf32>, vector<2x8x8xf32> -> vector<2x8x8xf32>
    "tpu.trace_stop"() : () -> ()
    %234 = vector.shape_cast %233 : vector<2x8x8xf32> to vector<16x8xf32>
    %235 = vector.extract_strided_slice %179 {offsets = [16, 0], sizes = [8, 32], strides = [1, 1]} : vector<32x32xf32> to vector<8x32xf32>
    %cst_86 = arith.constant dense<0.000000e+00> : vector<16x32xf32>
    %236 = tpu.matmul %234, %235, %cst_86 {dimension_numbers = #tpu.dot_dimension_numbers<[1], [0], [0], [1], [0, 0, 1, 1], [], []>} : vector<16x8xf32>, vector<8x32xf32>, vector<16x32xf32> -> vector<16x32xf32>
    %237 = arith.addf %218, %236 : vector<16x32xf32>
    %238 = vector.extract_strided_slice %178 {offsets = [0, 0, 24], sizes = [2, 8, 8], strides = [1, 1, 1]} : vector<2x8x96xf32> to vector<2x8x8xf32>
    %239 = vector.extract_strided_slice %178 {offsets = [0, 0, 56], sizes = [2, 8, 8], strides = [1, 1, 1]} : vector<2x8x96xf32> to vector<2x8x8xf32>
    %240 = vector.extract_strided_slice %178 {offsets = [0, 0, 88], sizes = [2, 8, 8], strides = [1, 1, 1]} : vector<2x8x96xf32> to vector<2x8x8xf32>
    "tpu.trace_start"() <{level = 10 : i32, message = "bnd,bmd->bnm"}> : () -> ()
    %cst_87 = arith.constant dense<0.000000e+00> : vector<2x8x8xf32>
    %241 = tpu.matmul %238, %239, %cst_87 {dimension_numbers = #tpu.dot_dimension_numbers<[2], [2], [1], [1], [0, 0, 0, 1, 1, 1], [0], [0]>} : vector<2x8x8xf32>, vector<2x8x8xf32>, vector<2x8x8xf32> -> vector<2x8x8xf32>
    "tpu.trace_stop"() : () -> ()
    %cst_88 = arith.constant dense<0xFF800000> : vector<2x8xf32>
    %242 = vector.multi_reduction <maximumf>, %241, %cst_88 [2] : vector<2x8x8xf32> to vector<2x8xf32>
    %243 = vector.shape_cast %242 : vector<2x8xf32> to vector<2x8x1xf32>
    %244 = vector.broadcast %243 : vector<2x8x1xf32> to vector<2x8x8xf32>
    %245 = arith.subf %241, %244 : vector<2x8x8xf32>
    %246 = math.exp %245 : vector<2x8x8xf32>
    %cst_89 = arith.constant dense<0.000000e+00> : vector<2x8xf32>
    %247 = vector.multi_reduction <add>, %246, %cst_89 [2] : vector<2x8x8xf32> to vector<2x8xf32>
    %248 = vector.shape_cast %247 : vector<2x8xf32> to vector<2x8x1xf32>
    %249 = tpu.reciprocal %248 {approx = true} : vector<2x8x1xf32> -> vector<2x8x1xf32>
    %250 = vector.broadcast %249 : vector<2x8x1xf32> to vector<2x8x8xf32>
    %251 = arith.mulf %246, %250 : vector<2x8x8xf32>
    "tpu.trace_start"() <{level = 10 : i32, message = "bnm,bmd->bnd"}> : () -> ()
    %cst_90 = arith.constant dense<0.000000e+00> : vector<2x8x8xf32>
    %252 = tpu.matmul %251, %240, %cst_90 {dimension_numbers = #tpu.dot_dimension_numbers<[2], [1], [1], [2], [0, 0, 0, 1, 1, 2], [0], [0]>} : vector<2x8x8xf32>, vector<2x8x8xf32>, vector<2x8x8xf32> -> vector<2x8x8xf32>
    "tpu.trace_stop"() : () -> ()
    %253 = vector.shape_cast %252 : vector<2x8x8xf32> to vector<16x8xf32>
    %254 = vector.extract_strided_slice %179 {offsets = [24, 0], sizes = [8, 32], strides = [1, 1]} : vector<32x32xf32> to vector<8x32xf32>
    %cst_91 = arith.constant dense<0.000000e+00> : vector<16x32xf32>
    %255 = tpu.matmul %253, %254, %cst_91 {dimension_numbers = #tpu.dot_dimension_numbers<[1], [0], [0], [1], [0, 0, 1, 1], [], []>} : vector<16x8xf32>, vector<8x32xf32>, vector<16x32xf32> -> vector<16x32xf32>
    %256 = arith.addf %237, %255 : vector<16x32xf32>
    %c0_92 = arith.constant 0 : index
    %c0_93 = arith.constant 0 : index
    %257 = vector.load %arg19[%c0_92, %c0_93] : memref<1x32xf32, #tpu.memory_space<vmem>>, vector<1x32xf32>
    %258 = vector.broadcast %257 : vector<1x32xf32> to vector<16x32xf32>
    %259 = arith.addf %256, %258 : vector<16x32xf32>
    %260 = vector.shape_cast %259 : vector<16x32xf32> to vector<2x8x32xf32>
    %261 = arith.addf %171, %260 : vector<2x8x32xf32>
    %cst_94 = arith.constant dense<0.000000e+00> : vector<2x32xf32>
    %262 = vector.multi_reduction <add>, %261, %cst_94 [1] : vector<2x8x32xf32> to vector<2x32xf32>
    %263 = vector.shape_cast %262 : vector<2x32xf32> to vector<2x1x32xf32>
    %cst_95 = arith.constant 8.000000e+00 : f32
    %264 = vector.broadcast %cst_95 : f32 to vector<2x1x32xf32>
    %265 = arith.divf %263, %264 : vector<2x1x32xf32>
    %266 = vector.broadcast %265 : vector<2x1x32xf32> to vector<2x8x32xf32>
    %267 = arith.subf %261, %266 : vector<2x8x32xf32>
    %268 = arith.mulf %267, %267 : vector<2x8x32xf32>
    %cst_96 = arith.constant dense<0.000000e+00> : vector<2x32xf32>
    %269 = vector.multi_reduction <add>, %268, %cst_96 [1] : vector<2x8x32xf32> to vector<2x32xf32>
    %270 = vector.shape_cast %269 : vector<2x32xf32> to vector<2x1x32xf32>
    %cst_97 = arith.constant 8.000000e+00 : f32
    %271 = vector.broadcast %cst_97 : f32 to vector<2x1x32xf32>
    %272 = arith.divf %270, %271 : vector<2x1x32xf32>
    %cst_98 = arith.constant 9.99999974E-6 : f32
    %273 = vector.broadcast %cst_98 : f32 to vector<2x1x32xf32>
    %274 = arith.addf %272, %273 : vector<2x1x32xf32>
    %275 = math.rsqrt %274 : vector<2x1x32xf32>
    %276 = vector.broadcast %275 : vector<2x1x32xf32> to vector<2x8x32xf32>
    %277 = arith.mulf %267, %276 : vector<2x8x32xf32>
    %c0_99 = arith.constant 0 : index
    %c0_100 = arith.constant 0 : index
    %278 = vector.load %arg20[%c0_99, %c0_100] : memref<1x32xf32, #tpu.memory_space<vmem>>, vector<1x32xf32>
    %279 = vector.shape_cast %278 : vector<1x32xf32> to vector<1x1x32xf32>
    %280 = vector.broadcast %279 : vector<1x1x32xf32> to vector<2x8x32xf32>
    %281 = arith.mulf %277, %280 : vector<2x8x32xf32>
    %c0_101 = arith.constant 0 : index
    %c0_102 = arith.constant 0 : index
    %282 = vector.load %arg21[%c0_101, %c0_102] : memref<1x32xf32, #tpu.memory_space<vmem>>, vector<1x32xf32>
    %283 = vector.shape_cast %282 : vector<1x32xf32> to vector<1x1x32xf32>
    %284 = vector.broadcast %283 : vector<1x1x32xf32> to vector<2x8x32xf32>
    %285 = arith.addf %281, %284 : vector<2x8x32xf32>
    %286 = vector.shape_cast %285 : vector<2x8x32xf32> to vector<16x32xf32>
    %c0_103 = arith.constant 0 : index
    %c0_104 = arith.constant 0 : index
    %287 = vector.load %arg22[%c0_103, %c0_104] : memref<32x64xf32, #tpu.memory_space<vmem>>, vector<32x64xf32>
    %cst_105 = arith.constant dense<0.000000e+00> : vector<16x64xf32>
    %288 = tpu.matmul %286, %287, %cst_105 {dimension_numbers = #tpu.dot_dimension_numbers<[1], [0], [0], [1], [0, 0, 1, 1], [], []>} : vector<16x32xf32>, vector<32x64xf32>, vector<16x64xf32> -> vector<16x64xf32>
    %c0_106 = arith.constant 0 : index
    %c0_107 = arith.constant 0 : index
    %289 = vector.load %arg23[%c0_106, %c0_107] : memref<1x64xf32, #tpu.memory_space<vmem>>, vector<1x64xf32>
    %290 = vector.broadcast %289 : vector<1x64xf32> to vector<16x64xf32>
    %291 = arith.addf %288, %290 : vector<16x64xf32>
    %cst_108 = arith.constant 0.000000e+00 : f32
    %292 = vector.broadcast %cst_108 : f32 to vector<16x64xf32>
    %293 = arith.maximumf %291, %292 : vector<16x64xf32>
    %c0_109 = arith.constant 0 : index
    %c0_110 = arith.constant 0 : index
    %294 = vector.load %arg24[%c0_109, %c0_110] : memref<64x32xf32, #tpu.memory_space<vmem>>, vector<64x32xf32>
    %cst_111 = arith.constant dense<0.000000e+00> : vector<16x32xf32>
    %295 = tpu.matmul %293, %294, %cst_111 {dimension_numbers = #tpu.dot_dimension_numbers<[1], [0], [0], [1], [0, 0, 1, 1], [], []>} : vector<16x64xf32>, vector<64x32xf32>, vector<16x32xf32> -> vector<16x32xf32>
    %c0_112 = arith.constant 0 : index
    %c0_113 = arith.constant 0 : index
    %296 = vector.load %arg25[%c0_112, %c0_113] : memref<1x32xf32, #tpu.memory_space<vmem>>, vector<1x32xf32>
    %297 = vector.broadcast %296 : vector<1x32xf32> to vector<16x32xf32>
    %298 = arith.addf %295, %297 : vector<16x32xf32>
    %299 = vector.shape_cast %298 : vector<16x32xf32> to vector<2x8x32xf32>
    %300 = arith.addf %285, %299 : vector<2x8x32xf32>
    %cst_114 = arith.constant dense<0.000000e+00> : vector<2x32xf32>
    %301 = vector.multi_reduction <add>, %300, %cst_114 [1] : vector<2x8x32xf32> to vector<2x32xf32>
    %302 = vector.shape_cast %301 : vector<2x32xf32> to vector<2x1x32xf32>
    %cst_115 = arith.constant 8.000000e+00 : f32
    %303 = vector.broadcast %cst_115 : f32 to vector<2x1x32xf32>
    %304 = arith.divf %302, %303 : vector<2x1x32xf32>
    %305 = vector.broadcast %304 : vector<2x1x32xf32> to vector<2x8x32xf32>
    %306 = arith.subf %300, %305 : vector<2x8x32xf32>
    %307 = arith.mulf %306, %306 : vector<2x8x32xf32>
    %cst_116 = arith.constant dense<0.000000e+00> : vector<2x32xf32>
    %308 = vector.multi_reduction <add>, %307, %cst_116 [1] : vector<2x8x32xf32> to vector<2x32xf32>
    %309 = vector.shape_cast %308 : vector<2x32xf32> to vector<2x1x32xf32>
    %cst_117 = arith.constant 8.000000e+00 : f32
    %310 = vector.broadcast %cst_117 : f32 to vector<2x1x32xf32>
    %311 = arith.divf %309, %310 : vector<2x1x32xf32>
    %cst_118 = arith.constant 9.99999974E-6 : f32
    %312 = vector.broadcast %cst_118 : f32 to vector<2x1x32xf32>
    %313 = arith.addf %311, %312 : vector<2x1x32xf32>
    %314 = math.rsqrt %313 : vector<2x1x32xf32>
    %315 = vector.broadcast %314 : vector<2x1x32xf32> to vector<2x8x32xf32>
    %316 = arith.mulf %306, %315 : vector<2x8x32xf32>
    %c0_119 = arith.constant 0 : index
    %c0_120 = arith.constant 0 : index
    %317 = vector.load %arg26[%c0_119, %c0_120] : memref<1x32xf32, #tpu.memory_space<vmem>>, vector<1x32xf32>
    %318 = vector.shape_cast %317 : vector<1x32xf32> to vector<1x1x32xf32>
    %319 = vector.broadcast %318 : vector<1x1x32xf32> to vector<2x8x32xf32>
    %320 = arith.mulf %316, %319 : vector<2x8x32xf32>
    %c0_121 = arith.constant 0 : index
    %c0_122 = arith.constant 0 : index
    %321 = vector.load %arg27[%c0_121, %c0_122] : memref<1x32xf32, #tpu.memory_space<vmem>>, vector<1x32xf32>
    %322 = vector.shape_cast %321 : vector<1x32xf32> to vector<1x1x32xf32>
    %323 = vector.broadcast %322 : vector<1x1x32xf32> to vector<2x8x32xf32>
    %324 = arith.addf %320, %323 : vector<2x8x32xf32>
    %c0_123 = arith.constant 0 : index
    %c0_124 = arith.constant 0 : index
    %c0_125 = arith.constant 0 : index
    %325 = vector.load %arg28[%c0_123, %c0_124, %c0_125] : memref<2x8x32xf32, #tpu.memory_space<vmem>>, vector<2x8x32xf32>
    tpu.vector_store %arg28[%c0_123, %c0_124, %c0_125], %324 {strides = array<i32>} : memref<2x8x32xf32, #tpu.memory_space<vmem>>, vector<2x8x32xf32>,
    return
  }
  func.func @transform_0(%arg0: i32) -> (i32, i32, i32) {
    %c0_i32 = arith.constant 0 : i32
    %c0_i32_0 = arith.constant 0 : i32
    %c0_i32_1 = arith.constant 0 : i32
    return %arg0, %c0_i32, %c0_i32_0 : i32, i32, i32
  }
  func.func @transform_1(%arg0: i32) -> (i32, i32) {
    %c0_i32 = arith.constant 0 : i32
    %c0_i32_0 = arith.constant 0 : i32
    %c0_i32_1 = arith.constant 0 : i32
    return %c0_i32, %c0_i32_0 : i32, i32
  }
  func.func @transform_2(%arg0: i32) -> (i32, i32) {
    %c0_i32 = arith.constant 0 : i32
    %c0_i32_0 = arith.constant 0 : i32
    %c0_i32_1 = arith.constant 0 : i32
    return %c0_i32, %c0_i32_0 : i32, i32
  }
  func.func @transform_3(%arg0: i32) -> (i32, i32) {
    %c0_i32 = arith.constant 0 : i32
    %c0_i32_0 = arith.constant 0 : i32
    %c0_i32_1 = arith.constant 0 : i32
    return %c0_i32, %c0_i32_0 : i32, i32
  }
  func.func @transform_4(%arg0: i32) -> (i32, i32) {
    %c0_i32 = arith.constant 0 : i32
    %c0_i32_0 = arith.constant 0 : i32
    %c0_i32_1 = arith.constant 0 : i32
    return %c0_i32, %c0_i32_0 : i32, i32
  }
  func.func @transform_5(%arg0: i32) -> (i32, i32) {
    %c0_i32 = arith.constant 0 : i32
    %c0_i32_0 = arith.constant 0 : i32
    %c0_i32_1 = arith.constant 0 : i32
    return %c0_i32, %c0_i32_0 : i32, i32
  }
  func.func @transform_6(%arg0: i32) -> (i32, i32) {
    %c0_i32 = arith.constant 0 : i32
    %c0_i32_0 = arith.constant 0 : i32
    %c0_i32_1 = arith.constant 0 : i32
    return %c0_i32, %c0_i32_0 : i32, i32
  }
  func.func @transform_7(%arg0: i32) -> (i32, i32) {
    %c0_i32 = arith.constant 0 : i32
    %c0_i32_0 = arith.constant 0 : i32
    %c0_i32_1 = arith.constant 0 : i32
    return %c0_i32, %c0_i32_0 : i32, i32
  }
  func.func @transform_8(%arg0: i32) -> (i32, i32) {
    %c0_i32 = arith.constant 0 : i32
    %c0_i32_0 = arith.constant 0 : i32
    %c0_i32_1 = arith.constant 0 : i32
    return %c0_i32, %c0_i32_0 : i32, i32
  }
  func.func @transform_9(%arg0: i32) -> (i32, i32) {
    %c0_i32 = arith.constant 0 : i32
    %c0_i32_0 = arith.constant 0 : i32
    %c0_i32_1 = arith.constant 0 : i32
    return %c0_i32, %c0_i32_0 : i32, i32
  }
  func.func @transform_10(%arg0: i32) -> (i32, i32) {
    %c0_i32 = arith.constant 0 : i32
    %c0_i32_0 = arith.constant 0 : i32
    %c0_i32_1 = arith.constant 0 : i32
    return %c0_i32, %c0_i32_0 : i32, i32
  }
  func.func @transform_11(%arg0: i32) -> (i32, i32) {
    %c0_i32 = arith.constant 0 : i32
    %c0_i32_0 = arith.constant 0 : i32
    %c0_i32_1 = arith.constant 0 : i32
    return %c0_i32, %c0_i32_0 : i32, i32
  }
  func.func @transform_12(%arg0: i32) -> (i32, i32) {
    %c0_i32 = arith.constant 0 : i32
    %c0_i32_0 = arith.constant 0 : i32
    %c0_i32_1 = arith.constant 0 : i32
    return %c0_i32, %c0_i32_0 : i32, i32
  }
  func.func @transform_13(%arg0: i32) -> (i32, i32) {
    %c0_i32 = arith.constant 0 : i32
    %c0_i32_0 = arith.constant 0 : i32
    %c0_i32_1 = arith.constant 0 : i32
    return %c0_i32, %c0_i32_0 : i32, i32
  }
  func.func @transform_14(%arg0: i32) -> (i32, i32) {
    %c0_i32 = arith.constant 0 : i32
    %c0_i32_0 = arith.constant 0 : i32
    %c0_i32_1 = arith.constant 0 : i32
    return %c0_i32, %c0_i32_0 : i32, i32
  }
  func.func @transform_15(%arg0: i32) -> (i32, i32) {
    %c0_i32 = arith.constant 0 : i32
    %c0_i32_0 = arith.constant 0 : i32
    %c0_i32_1 = arith.constant 0 : i32
    return %c0_i32, %c0_i32_0 : i32, i32
  }
  func.func @transform_16(%arg0: i32) -> (i32, i32) {
    %c0_i32 = arith.constant 0 : i32
    %c0_i32_0 = arith.constant 0 : i32
    %c0_i32_1 = arith.constant 0 : i32
    return %c0_i32, %c0_i32_0 : i32, i32
  }
  func.func @transform_17(%arg0: i32) -> (i32, i32) {
    %c0_i32 = arith.constant 0 : i32
    %c0_i32_0 = arith.constant 0 : i32
    %c0_i32_1 = arith.constant 0 : i32
    return %c0_i32, %c0_i32_0 : i32, i32
  }
  func.func @transform_18(%arg0: i32) -> (i32, i32) {
    %c0_i32 = arith.constant 0 : i32
    %c0_i32_0 = arith.constant 0 : i32
    %c0_i32_1 = arith.constant 0 : i32
    return %c0_i32, %c0_i32_0 : i32, i32
  }
  func.func @transform_19(%arg0: i32) -> (i32, i32) {
    %c0_i32 = arith.constant 0 : i32
    %c0_i32_0 = arith.constant 0 : i32
    %c0_i32_1 = arith.constant 0 : i32
    return %c0_i32, %c0_i32_0 : i32, i32
  }
  func.func @transform_20(%arg0: i32) -> (i32, i32) {
    %c0_i32 = arith.constant 0 : i32
    %c0_i32_0 = arith.constant 0 : i32
    %c0_i32_1 = arith.constant 0 : i32
    return %c0_i32, %c0_i32_0 : i32, i32
  }
  func.func @transform_21(%arg0: i32) -> (i32, i32) {
    %c0_i32 = arith.constant 0 : i32
    %c0_i32_0 = arith.constant 0 : i32
    %c0_i32_1 = arith.constant 0 : i32
    return %c0_i32, %c0_i32_0 : i32, i32
  }
  func.func @transform_22(%arg0: i32) -> (i32, i32) {
    %c0_i32 = arith.constant 0 : i32
    %c0_i32_0 = arith.constant 0 : i32
    %c0_i32_1 = arith.constant 0 : i32
    return %c0_i32, %c0_i32_0 : i32, i32
  }
  func.func @transform_23(%arg0: i32) -> (i32, i32) {
    %c0_i32 = arith.constant 0 : i32
    %c0_i32_0 = arith.constant 0 : i32
    %c0_i32_1 = arith.constant 0 : i32
    return %c0_i32, %c0_i32_0 : i32, i32
  }
  func.func @transform_24(%arg0: i32) -> (i32, i32) {
    %c0_i32 = arith.constant 0 : i32
    %c0_i32_0 = arith.constant 0 : i32
    %c0_i32_1 = arith.constant 0 : i32
    return %c0_i32, %c0_i32_0 : i32, i32
  }
  func.func @transform_25(%arg0: i32) -> (i32, i32) {
    %c0_i32 = arith.constant 0 : i32
    %c0_i32_0 = arith.constant 0 : i32
    %c0_i32_1 = arith.constant 0 : i32
    return %c0_i32, %c0_i32_0 : i32, i32
  }
  func.func @transform_26(%arg0: i32) -> (i32, i32) {
    %c0_i32 = arith.constant 0 : i32
    %c0_i32_0 = arith.constant 0 : i32
    %c0_i32_1 = arith.constant 0 : i32
    return %c0_i32, %c0_i32_0 : i32, i32
  }
  func.func @transform_27(%arg0: i32) -> (i32, i32, i32) {
    %c0_i32 = arith.constant 0 : i32
    %c0_i32_0 = arith.constant 0 : i32
    %c0_i32_1 = arith.constant 0 : i32
    return %arg0, %c0_i32, %c0_i32_0 : i32, i32, i32
  }
}

</mosaic_0001>

<bundles_post_ra>
// kernel: tsp_encoder_forward.1
= control target key start
LH: loop header
LB: loop body
LE: loop exit
PB: predicated region body
PF: predicated region fallthrough
CT: control target
= control target key end

     0   :  { %s5692_s0 = inlined_call_operand.vmem [shape: f32[2,8,2], index: 0, kind: input, shape index: {}]   ;;  %s5693_s1 = inlined_call_operand.vmem [shape: f32[2,32], index: 1, kind: input, shape index: {}]   ;;  %s5694_s2 = inlined_call_operand.vmem [shape: f32[1,32], index: 2, kind: input, shape index: {}]   ;;  %s5695_s3 = inlined_call_operand.vmem [shape: f32[32,96], index: 3, kind: input, shape index: {}]   ;;  %s5696_s4 = inlined_call_operand.vmem [shape: f32[1,96], index: 4, kind: input, shape index: {}]   ;;  %s5697_s5 = inlined_call_operand.vmem [shape: f32[32,32], index: 5, kind: input, shape index: {}]   ;;  %s5698_s6 = inlined_call_operand.vmem [shape: f32[1,32], index: 6, kind: input, shape index: {}]   ;;  %s5699_s7 = inlined_call_operand.vmem [shape: f32[1,32], index: 7, kind: input, shape index: {}]   ;;  %s5700_s8 = inlined_call_operand.vmem [shape: f32[1,32], index: 8, kind: input, shape index: {}]   ;;  %s5701_s9 = inlined_call_operand.vmem [shape: f32[32,64], index: 9, kind: input, shape index: {}]   ;;  %s5702_s10 = inlined_call_operand.vmem [shape: f32[1,64], index: 10, kind: input, shape index: {}]   ;;  %s5703_s11 = inlined_call_operand.vmem [shape: f32[64,32], index: 11, kind: input, shape index: {}]   ;;  %s5704_s12 = inlined_call_operand.vmem [shape: f32[1,32], index: 12, kind: input, shape index: {}]   ;;  %s5705_s13 = inlined_call_operand.vmem [shape: f32[1,32], index: 13, kind: input, shape index: {}]   ;;  %s5706_s14 = inlined_call_operand.vmem [shape: f32[1,32], index: 14, kind: input, shape index: {}]   ;;  %s5707_s15 = inlined_call_operand.vmem [shape: f32[32,96], index: 15, kind: input, shape index: {}]   ;;  %s5708_s16 = inlined_call_operand.vmem [shape: f32[1,96], index: 16, kind: input, shape index: {}]   ;;  %s5709_s17 = inlined_call_operand.vmem [shape: f32[32,32], index: 17, kind: input, shape index: {}]   ;;  %s5710_s18 = inlined_call_operand.vmem [shape: f32[1,32], index: 18, kind: input, shape index: {}]   ;;  %s5711_s19 = inlined_call_operand.vmem [shape: f32[1,32], index: 19, kind: input, shape index: {}]   ;;  %s5712_s20 = inlined_call_operand.vmem [shape: f32[1,32], index: 20, kind: input, shape index: {}]   ;;  %s5713_s21 = inlined_call_operand.vmem [shape: f32[32,64], index: 21, kind: input, shape index: {}]   ;;  %s5714_s22 = inlined_call_operand.vmem [shape: f32[1,64], index: 22, kind: input, shape index: {}]   ;;  %s5715_s23 = inlined_call_operand.vmem [shape: f32[64,32], index: 23, kind: input, shape index: {}]   ;;  %s5716_s24 = inlined_call_operand.vmem [shape: f32[1,32], index: 24, kind: input, shape index: {}]   ;;  %s5717_s25 = inlined_call_operand.vmem [shape: f32[1,32], index: 25, kind: input, shape index: {}]   ;;  %s5718_s26 = inlined_call_operand.vmem [shape: f32[1,32], index: 26, kind: input, shape index: {}]   ;;  %s5719_s27 = inlined_call_operand.hbm [shape: f32[2,8,32], index: 27, kind: output, shape index: {}]  }
   0x1   :  { %5741 = sst [smem:[#allocation5_spill]] %s5692_s0 }
   0x2   :  { %5742 = sst [smem:[#allocation6_spill]] %s5693_s1 }
   0x3   :  { %5743 = sst [smem:[#allocation7_spill]] %s5694_s2 }
   0x4   :  { %5744 = sst [smem:[#allocation8_spill]] %s5695_s3 }
   0x5   :  { %5745 = sst [smem:[#allocation9_spill]] %s5696_s4 }
   0x6   :  { %5746 = sst [smem:[#allocation10_spill]] %s5697_s5 }
   0x7   :  { %5747 = sst [smem:[#allocation11_spill]] %s5698_s6 }
   0x8   :  { %5748 = sst [smem:[#allocation12_spill]] %s5699_s7 }
   0x9   :  { %5749 = sst [smem:[#allocation13_spill]] %s5700_s8 }
   0xa   :  { %5750 = sst [smem:[#allocation14_spill]] %s5701_s9 }
   0xb   :  { %5751 = sst [smem:[#allocation15_spill]] %s5702_s10 }
   0xc   :  { %5752 = sst [smem:[#allocation16_spill]] %s5703_s11 }
   0xd   :  { %s5753_s8 = sld [smem:[#allocation5_spill]]  ;;  %v4992_v2 = vmov 0  }
   0xe   :  { %4886 = vset.pattern.permute.xlu1 %v4992_v2  ;;  %4884 = vset.pattern.permute.xlu0 %v4992_v2 }
  0x13   :  { %v88_v0 = vld [vmem:[%s5753_s8 + $0x8] sm:$0xff]  ;;  %v87_v1 = vld [vmem:[%s5753_s8] sm:$0xff] }
  0x14   :  { %32 = vsyncpa [#allocation3], 0  ;;  %97 = vperm.xlu1 %4886, %v88_v0   ;;  %92 = vperm.xlu0 %4884, %v87_v1   ;;  %s5754_s0 = sld [smem:[#allocation8_spill]]  ;;  %v4993_v6 = vmov 1   ;;  %v100_v10 = vlaneseq  ;;  %s5755_s4 = sld [smem:[#allocation6_spill]]  ;;  %vm142_vm0 = vcmask 261120  }
  0x15   :  { %s5756_s9 = sld [smem:[#allocation7_spill]]  ;;  %v4994_v30 = vmov 0.0   ;;  %vm4995_vm1 = vmmov 0   ;;  %s4996_s10 = smov 96   ;;  %vm231_vm2 = vcmask 64512   ;;  %vm2056_vm3 = vcmask 523264  }
  0x16   :  { %v101_v11 = vshrl.u32 %v100_v10, 7  ;;  %4529 = vmatprep.subr.mxu0 %v4994_v30  ;;  %4531 = vmatprep.mubr.msk.f32.mxu0 %vm4995_vm1, %v4994_v30  ;;  %s4997_s29 = smov 88   ;;  %s4998_s1 = smov 120  }
  0x17   :  { %s5739_s6 = smov 64   ;;  %s5737_s11 = smov 80  }
  0x18   :  { %4887 = vset.pattern.permute.xlu1 %v4993_v6  ;;  %4885 = vset.pattern.permute.xlu0 %v4993_v6  ;;  %v102_v12 = vsub.s32 0, %v101_v11  ;;  %v116_v13 = vsub.s32 1, %v101_v11  ;;  %s5735_s2 = smov 112   ;;  %s5733_s3 = smov 56  }
  0x19   :  { %111 = vperm.xlu1 %4887, %v88_v0   ;;  %107 = vperm.xlu0 %4885, %v87_v1   ;;  %s5731_s7 = smov 48   ;;  %s5727_s8 = smov 104  }
  0x1a   :  { %v131_v3 = vld [vmem:[%s5754_s0] sm:$0xff]  ;;  %v132_v4 = vld [vmem:[%s5754_s0 + $0x8] sm:$0xff]  ;;  %v133_v7 = vld [vmem:[%s5754_s0 + $0x10] sm:$0xff]  ;;  %s5758_s5 = sld [smem:[#allocation10_spill]]  ;;  %s5725_s28 = smov 40  }
  0x1b   :  { %v4790_v5 = vpack.c.bf16 %v132_v4, %v131_v3  ;;  %v134_v8 = vld [vmem:[%s5754_s0 + $0x18] sm:$0xff]  ;;  %v89_v14 = vld [vmem:[%s5755_s4] sm:$0x3]  ;;  %s5757_s0 = sld [smem:[#allocation9_spill]]  ;;  %s5729_s4 = smov 72  }
  0x1c   :  { %v4794_v9 = vpack.c.bf16 %v134_v8, %v133_v7  ;;  %v103_v17 = vrot.slane %v89_v14, %v102_v12  ;;  %v117_v18 = vrot.slane %v89_v14, %v116_v13  ;;  %v4283_v25 = vld [vmem:[%s5756_s9] ss:$0 sm:$0xff]  ;;  %s5761_s9 = sld [smem:[#allocation11_spill]]  ;;  %s5764_s30 = sld [smem:[#allocation15_spill]] }
  0x1d   :  { %4791 = vmatprep.subr.bf16.mxu1 %v4790_v5 }
  0x1e   :  { %4793 = vmatpush3.bf16.msra.mxu1 %v4790_v5 }
  0x1f   :  { %4795 = vmatprep.subr.bf16.mxu1 %v4794_v9 }
  0x21   :  { %v4284_v31 = vld [vmem:[%s5757_s0] ss:$0 sm:$0xff]  ;;  %s5759_s0 = sld [smem:[#allocation14_spill]] }
  0x22   :  { %4797 = vmatpush3.bf16.msra.mxu1 %v4794_v9 }
  0x23   :  { %4519 = vmatprep.subr.mxu1 %v4994_v30 }
  0x93   :  { %v93_v15 = vpop.permute.xlu0 %92  ;;  %v98_v16 = vpop.permute.xlu1 %97 }
  0x94   :  { %v104_v21 = vmul.f32 %v103_v17, %v93_v15  ;;  %v105_v22 = vmul.f32 %v103_v17, %v98_v16 }
  0x98   :  { %v112_v19 = vpop.permute.xlu1 %111  ;;  %v108_v20 = vpop.permute.xlu0 %107 }
  0x99   :  { %v119_v23 = vmul.f32 %v117_v18, %v112_v19  ;;  %v118_v24 = vmul.f32 %v117_v18, %v108_v20 }
  0x9b   :  { %v121_v26 = vadd.f32 %v119_v23, %v105_v22  ;;  %v120_v27 = vadd.f32 %v118_v24, %v104_v21 }
  0x9d   :  { %v5174_v28 = vadd.f32 %v4283_v25, %v120_v27  ;;  %v5176_v29 = vadd.f32 %v4283_v25, %v121_v26 }
  0x9f   :  { %4516 = vmatprep.mubr.msk.f32.mxu1 %vm142_vm0, %v5174_v28 }
  0xa0   :  { %4517 = vmatmul.mubr.msk.f32.vlgmr.msra.gmra.mrb[0].mxu1 %vm142_vm0, %v5176_v29 }
  0xa1   :  { %4521 = vmatprep.mubr.msk.f32.mxu1 %vm4995_vm1, %v4994_v30 }
 0x173   :  { %v4518_v32 = vpop.f32.mrb[0].mxu1 }
 0x174   :  { %v5191_v33 = vadd.f32 %v4518_v32, %v4284_v31  ;;  %v215_v34 = vpop.f32.mrb[1].mxu1 }
 0x175   :  { %v5193_v35 = vadd.f32 %v4284_v31, %v215_v34 }
 0x176   :  { %307 = vrot.lane.b32.xlu0 %v5191_v33, %s4996_s10 }
 0x177   :  { %229 = vrot.lane.b32.xlu1 %v5193_v35, %s4996_s10 }
 0x1e8   :  { %v308_v37 = vpop.permute.xlu0 %307 }
 0x1e9   :  { %v230_v36 = vpop.permute.xlu1 %229 }
 0x1ea   :  { %4520 = vmatpush3.xpose.msk.msra.mxu1 %vm231_vm2, %v230_v36 }
 0x1eb   :  { %4524 = vmatprep.subr.mxu1 %v4994_v30 }
 0x1ed   :  { %4522 = vmatmul.mubr.msk.f32.vlgmr.msra.gmra.mrb[2].mxu1 %vm231_vm2, %v5193_v35 }
 0x1ee   :  { %4525 = vmatpush3.xpose.msk.msra.mxu1 %vm231_vm2, %v308_v37  ;;  %4526 = vmatprep.mubr.msk.f32.mxu1 %vm4995_vm1, %v4994_v30 }
 0x1ef   :  { %4534 = vmatprep.subr.mxu1 %v4994_v30 }
 0x1f1   :  { %4527 = vmatmul.mubr.msk.f32.vlgmr.msra.gmra.mrb[4].mxu1 %vm231_vm2, %v5191_v33 }
 0x1f2   :  { %4536 = vmatprep.mubr.msk.f32.mxu1 %vm4995_vm1, %v4994_v30 }
 0x2c0   :  { %v302_v38 = vpop.f32.mrb[2].mxu1 }
 0x2c1   :  { %v4523_v39 = vpop.f32.mrb[3].mxu1  ;;  %v383_v48 = vsel %vm231_vm2, %v302_v38, -inf }
 0x2c4   :  { %v379_v40 = vpop.f32.mrb[4].mxu1 }
 0x2c5   :  { %v4528_v41 = vpop.f32.mrb[5].mxu1  ;;  %v386_v42 = vsel %vm231_vm2, %v379_v40, -inf }
 0x2c6   :  { %387 = vmax.xlane.f32.xlu1 %v386_v42 }
 0x2d7   :  { %637 = vrot.lane.b32.xlu1 %v5191_v33, %s4997_s29 }
 0x2db   :  { %635 = vrot.lane.b32.xlu1 %v5191_v33, %s4998_s1 }
 0x353   :  { %v388_v43 = vpop.xlane.xlu1 %387 }
 0x354   :  { %v390_v44 = vsub.f32 %v379_v40, %v388_v43 }
 0x356   :  { %v393_v45 = vmul.f32 1.442695, %v390_v44 }
 0x357   :  { %v638_v52 = vpop.permute.xlu1 %637 }
 0x358   :  { %4888 = vpow2.f32 %v393_v45 }
 0x35b   :  { %v636_v54 = vpop.permute.xlu1 %635 }
 0x362   :  { %v4889_v46 = vpop.eup %4888 }
 0x363   :  { %v398_v47 = vsel %vm231_vm2, %v4889_v46, 0.0 }
 0x364   :  { %399 = vadd.xlane.f32.xlu0 %v398_v47 }
 0x37a   :  { %481 = vrot.lane.b32.xlu0 %v5191_v33, %s5739_s6 }
 0x399   :  { %384 = vmax.xlane.f32.xlu0 %v383_v48  ;;  %v225_v48 = vld [vmem:[%s5758_s5 + $0x8] sm:$0xff] }
 0x3af   :  { %405 = vrot.lane.b32.xlu0 %v5193_v35, %s5739_s6 }
 0x3b3   :  { %557 = vrot.lane.b32.xlu0 %v5193_v35, %s4998_s1 }
 0x3f1   :  { %v400_v49 = vpop.xlane.xlu0 %399 }
 0x3f2   :  { %4890 = vrcp.f32 %v400_v49  ;;  %v224_v49 = vld [vmem:[%s5758_s5] sm:$0xff] }
 0x3f5   :  { %v482_v50 = vpop.permute.xlu0 %481 }
 0x3f6   :  { %4535 = vmatpush3.msra.mxu1 %v482_v50 }
 0x3f7   :  { %4544 = vmatprep.subr.mxu1 %v4994_v30 }
 0x3fc   :  { %v4891_v51 = vpop.eup %4890 }
 0x3fd   :  { %v404_v53 = vmul.f32 %v4891_v51, %v4889_v46 }
 0x3ff   :  { %4537 = vmatmul.mubr.msk.f32.vlgmr.msra.gmra.mrb[6].mxu1 %vm231_vm2, %v404_v53 }
 0x400   :  { %4545 = vmatpush3.xpose.msk.msra.mxu1 %vm231_vm2, %v638_v52  ;;  %4546 = vmatprep.mubr.msk.f32.mxu1 %vm4995_vm1, %v4994_v30 }
 0x401   :  { %4554 = vmatprep.subr.mxu1 %v4994_v30 }
 0x403   :  { %4547 = vmatmul.mubr.msk.f32.vlgmr.msra.gmra.mrb[8].mxu1 %vm231_vm2, %v636_v54 }
 0x404   :  { %4556 = vmatprep.mubr.msk.f32.mxu1 %vm4995_vm1, %v4994_v30 }
 0x426   :  { %v385_v55 = vpop.xlane.xlu0 %384 }
 0x427   :  { %v389_v56 = vsub.f32 %v302_v38, %v385_v55 }
 0x429   :  { %v391_v57 = vmul.f32 1.442695, %v389_v56 }
 0x42a   :  { %v406_v58 = vpop.permute.xlu0 %405 }
 0x42b   :  { %4892 = vpow2.f32 %v391_v57  ;;  %4530 = vmatpush3.msra.mxu0 %v406_v58 }
 0x42c   :  { %4539 = vmatprep.subr.mxu0 %v4994_v30 }
 0x42e   :  { %v558_v3 = vpop.permute.xlu0 %557 }
 0x435   :  { %v4893_v59 = vpop.eup %4892 }
 0x436   :  { %v395_v60 = vsel %vm231_vm2, %v4893_v59, 0.0 }
 0x437   :  { %396 = vadd.xlane.f32.xlu1 %v395_v60 }
 0x448   :  { %559 = vrot.lane.b32.xlu1 %v5193_v35, %s4997_s29 }
 0x4c4   :  { %v397_v61 = vpop.xlane.xlu1 %396 }
 0x4c5   :  { %4894 = vrcp.f32 %v397_v61 }
 0x4c8   :  { %v560_v0 = vpop.permute.xlu1 %559 }
 0x4cf   :  { %v4895_v62 = vpop.eup %4894 }
 0x4d0   :  { %v403_v63 = vmul.f32 %v4895_v62, %v4893_v59 }
 0x4d2   :  { %4532 = vmatmul.mubr.msk.f32.vlgmr.msra.gmra.mrb[0].mxu0 %vm231_vm2, %v403_v63  ;;  %v5238_v1 = vpop.f32.mrb[6].mxu1 }
 0x4d3   :  { %4540 = vmatpush3.xpose.msk.msra.mxu0 %vm231_vm2, %v560_v0  ;;  %v4538_v2 = vpop.f32.mrb[7].mxu1  ;;  %4541 = vmatprep.mubr.msk.f32.mxu0 %vm4995_vm1, %v4994_v30  ;;  %v226_v0 = vld [vmem:[%s5758_s5 + $0x10] sm:$0xff] }
 0x4d4   :  { %4549 = vmatprep.subr.mxu0 %v4994_v30 }
 0x4d6   :  { %4542 = vmatmul.mubr.msk.f32.vlgmr.msra.gmra.mrb[2].mxu0 %vm231_vm2, %v558_v3  ;;  %v709_v4 = vpop.f32.mrb[8].mxu1 }
 0x4d7   :  { %v4548_v5 = vpop.f32.mrb[9].mxu1  ;;  %v716_v6 = vsel %vm231_vm2, %v709_v4, -inf  ;;  %4551 = vmatprep.mubr.msk.f32.mxu0 %vm4995_vm1, %v4994_v30 }
 0x4d8   :  { %717 = vmax.xlane.f32.xlu1 %v716_v6 }
 0x4e9   :  { %1051 = vrot.lane.b32.xlu1 %v5193_v35, %s5737_s11 }
 0x4ed   :  { %1049 = vrot.lane.b32.xlu1 %v5193_v35, %s5735_s2 }
 0x4f1   :  { %1127 = vrot.lane.b32.xlu1 %v5191_v33, %s5735_s2  ;;  %s5760_s2 = sld [smem:[#allocation16_spill]] }
 0x565   :  { %v718_v7 = vpop.xlane.xlu1 %717 }
 0x566   :  { %v720_v8 = vsub.f32 %v709_v4, %v718_v7 }
 0x568   :  { %v723_v9 = vmul.f32 1.442695, %v720_v8 }
 0x569   :  { %v1052_v19 = vpop.permute.xlu1 %1051 }
 0x56a   :  { %4896 = vpow2.f32 %v723_v9 }
 0x56d   :  { %v1050_v22 = vpop.permute.xlu1 %1049 }
 0x571   :  { %v1128_v24 = vpop.permute.xlu1 %1127 }
 0x574   :  { %v4897_v10 = vpop.eup %4896 }
 0x575   :  { %v728_v11 = vsel %vm231_vm2, %v4897_v10, 0.0 }
 0x576   :  { %729 = vadd.xlane.f32.xlu0 %v728_v11 }
 0x58c   :  { %811 = vrot.lane.b32.xlu0 %v5191_v33, %s5733_s3 }
 0x590   :  { %1129 = vrot.lane.b32.xlu0 %v5191_v33, %s5737_s11 }
 0x5a5   :  { %v5259_v12 = vpop.f32.mrb[0].mxu0 }
 0x5a6   :  { %v4533_v13 = vpop.f32.mrb[1].mxu0 }
 0x5a9   :  { %v631_v14 = vpop.f32.mrb[2].mxu0 }
 0x5aa   :  { %v4543_v15 = vpop.f32.mrb[3].mxu0  ;;  %v713_v16 = vsel %vm231_vm2, %v631_v14, -inf }
 0x5af   :  { %714 = vmax.xlane.f32.xlu0 %v713_v16 }
 0x5c5   :  { %735 = vrot.lane.b32.xlu0 %v5193_v35, %s5733_s3 }
 0x5c9   :  { %1303 = vrot.lane.b32.xlu0 %v5191_v33, %s5731_s7 }
 0x5cd   :  { %1464 = vrot.lane.b32.xlu0 %v5193_v35, %s5729_s4 }
 0x5d1   :  { %1542 = vrot.lane.b32.xlu0 %v5191_v33, %s5729_s4  ;;  %s5762_s4 = sld [smem:[#allocation12_spill]] }
 0x5d5   :  { %1462 = vrot.lane.b32.xlu0 %v5193_v35, %s5727_s8 }
 0x5d9   :  { %1540 = vrot.lane.b32.xlu0 %v5191_v33, %s5727_s8  ;;  %s5771_s8 = smov 104  }
 0x603   :  { %v730_v17 = vpop.xlane.xlu0 %729 }
 0x604   :  { %4898 = vrcp.f32 %v730_v17 }
 0x607   :  { %v812_v18 = vpop.permute.xlu0 %811 }
 0x608   :  { %4555 = vmatpush3.msra.mxu1 %v812_v18 }
 0x609   :  { %4569 = vmatprep.subr.mxu1 %v4994_v30 }
 0x60b   :  { %v1130_v23 = vpop.permute.xlu0 %1129 }
 0x60e   :  { %v4899_v20 = vpop.eup %4898 }
 0x60f   :  { %v734_v21 = vmul.f32 %v4899_v20, %v4897_v10 }
 0x611   :  { %4557 = vmatmul.mubr.msk.f32.vlgmr.msra.gmra.mrb[10].mxu1 %vm231_vm2, %v734_v21 }
 0x612   :  { %4570 = vmatpush3.xpose.msk.msra.mxu1 %vm231_vm2, %v1052_v19  ;;  %4571 = vmatprep.mubr.msk.f32.mxu1 %vm4995_vm1, %v4994_v30 }
 0x613   :  { %4574 = vmatprep.subr.mxu1 %v4994_v30 }
 0x615   :  { %4572 = vmatmul.mubr.msk.f32.vlgmr.msra.gmra.mrb[12].mxu1 %vm231_vm2, %v1050_v22 }
 0x616   :  { %4575 = vmatpush3.xpose.msk.msra.mxu1 %vm231_vm2, %v1130_v23  ;;  %4576 = vmatprep.mubr.msk.f32.mxu1 %vm4995_vm1, %v4994_v30 }
 0x617   :  { %4584 = vmatprep.subr.mxu1 %v4994_v30 }
 0x619   :  { %4577 = vmatmul.mubr.msk.f32.vlgmr.msra.gmra.mrb[14].mxu1 %vm231_vm2, %v1128_v24 }
 0x61a   :  { %4586 = vmatprep.mubr.msk.f32.mxu1 %vm4995_vm1, %v4994_v30 }
 0x63c   :  { %v715_v25 = vpop.xlane.xlu0 %714 }
 0x63d   :  { %v719_v26 = vsub.f32 %v631_v14, %v715_v25 }
 0x63f   :  { %v721_v27 = vmul.f32 1.442695, %v719_v26 }
 0x640   :  { %v736_v31 = vpop.permute.xlu0 %735 }
 0x641   :  { %4900 = vpow2.f32 %v721_v27  ;;  %4550 = vmatpush3.msra.mxu0 %v736_v31 }
 0x642   :  { %4559 = vmatprep.subr.mxu0 %v225_v48 }
 0x644   :  { %v1304_v32 = vpop.permute.xlu0 %1303 }
 0x645   :  { %4585 = vmatpush3.msra.mxu1 %v1304_v32 }
 0x646   :  { %4594 = vmatprep.subr.mxu1 %v4994_v30 }
 0x648   :  { %v1465_v3 = vpop.permute.xlu0 %1464 }
 0x64b   :  { %v4901_v34 = vpop.eup %4900 }
 0x64c   :  { %v725_v36 = vsel %vm231_vm2, %v4901_v34, 0.0  ;;  %v1543_v6 = vpop.permute.xlu0 %1542 }
 0x64d   :  { %726 = vadd.xlane.f32.xlu1 %v725_v36 }
 0x650   :  { %v1463_v8 = vpop.permute.xlu0 %1462 }
 0x654   :  { %v1541_v13 = vpop.permute.xlu0 %1540 }
 0x6da   :  { %v727_v37 = vpop.xlane.xlu1 %726 }
 0x6db   :  { %4902 = vrcp.f32 %v727_v37 }
 0x6e4   :  { %v883_v38 = vpop.f32.mrb[10].mxu1 }
 0x6e5   :  { %v4903_v39 = vpop.eup %4902  ;;  %v4558_v40 = vpop.f32.mrb[11].mxu1 }
 0x6e6   :  { %v733_v41 = vmul.f32 %v4903_v39, %v4901_v34  ;;  %v227_v39 = vld [vmem:[%s5758_s5 + $0x18] sm:$0xff] }
 0x6e8   :  { %4552 = vmatmul.mubr.msk.f32.vlgmr.msra.gmra.mrb[4].mxu0 %vm231_vm2, %v733_v41  ;;  %v1123_v42 = vpop.f32.mrb[12].mxu1 }
 0x6e9   :  { %v4573_v43 = vpop.f32.mrb[13].mxu1  ;;  %v1205_v44 = vsel %vm231_vm2, %v1123_v42, -inf  ;;  %4560 = vmatpush3.msra.mxu0 %v225_v48 }
 0x6ea   :  { %1206 = vmax.xlane.f32.xlu1 %v1205_v44  ;;  %4564 = vmatprep.subr.mxu0 %v224_v49 }
 0x6ec   :  { %v1201_v45 = vpop.f32.mrb[14].mxu1 }
 0x6ed   :  { %v4578_v46 = vpop.f32.mrb[15].mxu1  ;;  %v1208_v47 = vsel %vm231_vm2, %v1201_v45, -inf }
 0x6ee   :  { %1209 = vmax.xlane.f32.xlu1 %v1208_v47  ;;  %v1947_v46 = vld [vmem:[%s5759_s0] sm:$0xff]  ;;  %v1948_v47 = vld [vmem:[%s5759_s0 + $0x8] sm:$0xff] }
 0x6ef   :  { %v4798_v48 = vpack.c.bf16 %v1948_v47, %v1947_v46 }
 0x777   :  { %v1207_v50 = vpop.xlane.xlu1 %1206 }
 0x778   :  { %v1211_v51 = vsub.f32 %v1123_v42, %v1207_v50  ;;  %v1950_v50 = vld [vmem:[%s5759_s0 + $0x18] sm:$0xff] }
 0x77a   :  { %v1213_v52 = vmul.f32 1.442695, %v1211_v51 }
 0x77b   :  { %v1210_v53 = vpop.xlane.xlu1 %1209 }
 0x77c   :  { %4904 = vpow2.f32 %v1213_v52  ;;  %v1212_v54 = vsub.f32 %v1201_v45, %v1210_v53  ;;  %v2041_v52 = vld [vmem:[%s5760_s2] sm:$0xff]  ;;  %v2042_v53 = vld [vmem:[%s5760_s2 + $0x8] sm:$0xff] }
 0x77e   :  { %v1215_v55 = vmul.f32 1.442695, %v1212_v54  ;;  %v2043_v54 = vld [vmem:[%s5760_s2 + $0x10] sm:$0xff] }
 0x780   :  { %4906 = vpow2.f32 %v1215_v55  ;;  %v4806_v55 = vpack.c.bf16 %v2042_v53, %v2041_v52  ;;  %v2047_v53 = vld [vmem:[%s5760_s2 + $0x30] sm:$0xff] }
 0x786   :  { %v4905_v56 = vpop.eup %4904 }
 0x787   :  { %v1217_v57 = vsel %vm231_vm2, %v4905_v56, 0.0 }
 0x788   :  { %1218 = vadd.xlane.f32.xlu1 %v1217_v57 }
 0x78a   :  { %v4907_v58 = vpop.eup %4906 }
 0x78b   :  { %v1220_v59 = vsel %vm231_vm2, %v4907_v58, 0.0 }
 0x78c   :  { %1221 = vadd.xlane.f32.xlu1 %v1220_v59  ;;  %v2046_v59 = vld [vmem:[%s5760_s2 + $0x28] sm:$0xff] }
 0x79d   :  { %1227 = vrot.lane.b32.xlu1 %v5193_v35, %s5731_s7  ;;  %s5763_s7 = sld [smem:[#allocation13_spill]] }
 0x7bb   :  { %v807_v60 = vpop.f32.mrb[4].mxu0 }
 0x7bc   :  { %v4553_v61 = vpop.f32.mrb[5].mxu0  ;;  %4561 = vmatprep.mubr.msk.f32.mxu0 %vm231_vm2, %v807_v60 }
 0x7bd   :  { %4562 = vmatmul.mubr.msk.f32.vlgmr.msra.gmra.mrb[6].mxu0 %vm231_vm2, %v883_v38  ;;  %v4319_v61 = vld [vmem:[%s5761_s9] ss:$0 sm:$0xff]  ;;  %s5772_s9 = smov 40  }
 0x7be   :  { %4566 = vmatprep.mubr.msk.f32.mxu0 %vm231_vm2, %v5259_v12  ;;  %4565 = vmatpush3.msra.mxu0 %v224_v49  ;;  %v1949_v49 = vld [vmem:[%s5759_s0 + $0x10] sm:$0xff] }
 0x7bf   :  { %4579 = vmatprep.subr.mxu0 %v4994_v30  ;;  %v4802_v51 = vpack.c.bf16 %v1950_v50, %v1949_v49  ;;  %v4321_v49 = vld [vmem:[%s5763_s7] ss:$0 sm:$0xff] }
 0x7c5   :  { %4567 = vmatmul.mubr.msk.f32.vlgmr.msra.gmra.mrb[6].mxu0 %vm231_vm2, %v5238_v1 }
 0x7c6   :  { %4581 = vmatprep.mubr.msk.f32.mxu0 %vm4995_vm1, %v4994_v30 }
 0x815   :  { %v1219_v62 = vpop.xlane.xlu1 %1218 }
 0x816   :  { %4908 = vrcp.f32 %v1219_v62 }
 0x819   :  { %v1222_v63 = vpop.xlane.xlu1 %1221 }
 0x81a   :  { %4910 = vrcp.f32 %v1222_v63 }
 0x81d   :  { %v1228_v2 = vpop.permute.xlu1 %1227 }
 0x81e   :  { %4580 = vmatpush3.msra.mxu0 %v1228_v2 }
 0x81f   :  { %4589 = vmatprep.subr.mxu0 %v226_v0 }
 0x820   :  { %v4909_v4 = vpop.eup %4908 }
 0x821   :  { %v1225_v5 = vmul.f32 %v4909_v4, %v4905_v56  ;;  %v2044_v56 = vld [vmem:[%s5760_s2 + $0x18] sm:$0xff] }
 0x822   :  { %v4810_v57 = vpack.c.bf16 %v2044_v56, %v2043_v54  ;;  %v2048_v54 = vld [vmem:[%s5760_s2 + $0x38] sm:$0xff]  ;;  %v4322_v56 = vld [vmem:[%s5764_s30] ss:$0 sm:$0xff] }
 0x823   :  { %4582 = vmatmul.mubr.msk.f32.vlgmr.msra.gmra.mrb[8].mxu0 %vm231_vm2, %v1225_v5 }
 0x824   :  { %v4911_v1 = vpop.eup %4910  ;;  %4590 = vmatpush3.msra.mxu0 %v226_v0 }
 0x825   :  { %v1226_v7 = vmul.f32 %v4911_v1, %v4907_v58  ;;  %4599 = vmatprep.subr.mxu0 %v4994_v30  ;;  %v2045_v58 = vld [vmem:[%s5760_s2 + $0x20] sm:$0xff] }
 0x826   :  { %v4814_v60 = vpack.c.bf16 %v2046_v59, %v2045_v58 }
 0x827   :  { %4587 = vmatmul.mubr.msk.f32.vlgmr.msra.gmra.mrb[16].mxu1 %vm231_vm2, %v1226_v7 }
 0x828   :  { %4595 = vmatpush3.xpose.msk.msra.mxu1 %vm231_vm2, %v1465_v3  ;;  %4596 = vmatprep.mubr.msk.f32.mxu1 %vm4995_vm1, %v4994_v30 }
 0x829   :  { %4604 = vmatprep.subr.mxu1 %v4994_v30 }
 0x82b   :  { %4597 = vmatmul.mubr.msk.f32.vlgmr.msra.gmra.mrb[18].mxu1 %vm231_vm2, %v1463_v8 }
 0x82c   :  { %4606 = vmatprep.mubr.msk.f32.mxu1 %vm4995_vm1, %v4994_v30 }
 0x8f6   :  { %v1299_v9 = vpop.f32.mrb[8].mxu0 }
 0x8f7   :  { %v4583_v10 = vpop.f32.mrb[9].mxu0  ;;  %4591 = vmatprep.mubr.msk.f32.mxu0 %vm231_vm2, %v1299_v9 }
 0x8fa   :  { %v1375_v11 = vpop.f32.mrb[16].mxu1 }
 0x8fb   :  { %v4588_v12 = vpop.f32.mrb[17].mxu1  ;;  %4592 = vmatmul.mubr.msk.f32.vlgmr.msra.gmra.mrb[6].mxu0 %vm231_vm2, %v1375_v11 }
 0x8fc   :  { %4600 = vmatpush3.xpose.msk.msra.mxu0 %vm231_vm2, %v1543_v6  ;;  %4601 = vmatprep.mubr.msk.f32.mxu0 %vm4995_vm1, %v4994_v30 }
 0x8fd   :  { %4609 = vmatprep.subr.mxu0 %v4994_v30 }
 0x8fe   :  { %v1536_v14 = vpop.f32.mrb[18].mxu1 }
 0x8ff   :  { %v4598_v15 = vpop.f32.mrb[19].mxu1  ;;  %4602 = vmatmul.mubr.msk.f32.vlgmr.msra.gmra.mrb[10].mxu0 %vm231_vm2, %v1541_v13  ;;  %v1618_v16 = vsel %vm231_vm2, %v1536_v14, -inf }
 0x900   :  { %1619 = vmax.xlane.f32.xlu1 %v1618_v16  ;;  %4611 = vmatprep.mubr.msk.f32.mxu0 %vm4995_vm1, %v4994_v30 }
 0x98d   :  { %v1620_v17 = vpop.xlane.xlu1 %1619 }
 0x98e   :  { %v1624_v18 = vsub.f32 %v1536_v14, %v1620_v17 }
 0x990   :  { %v1626_v19 = vmul.f32 1.442695, %v1624_v18 }
 0x992   :  { %4912 = vpow2.f32 %v1626_v19 }
 0x99c   :  { %v4913_v23 = vpop.eup %4912 }
 0x99d   :  { %v1630_v24 = vsel %vm231_vm2, %v4913_v23, 0.0 }
 0x9d2   :  { %v1614_v20 = vpop.f32.mrb[10].mxu0 }
 0x9d3   :  { %v4603_v21 = vpop.f32.mrb[11].mxu0  ;;  %v1621_v22 = vsel %vm231_vm2, %v1614_v20, -inf }
 0x9d4   :  { %1622 = vmax.xlane.f32.xlu0 %v1621_v22 }
 0x9d8   :  { %1631 = vadd.xlane.f32.xlu0 %v1630_v24 }
 0x9ee   :  { %1640 = vrot.lane.b32.xlu0 %v5193_v35, %s5725_s28 }
 0xa61   :  { %v1623_v25 = vpop.xlane.xlu0 %1622 }
 0xa62   :  { %v1625_v26 = vsub.f32 %v1614_v20, %v1623_v25 }
 0xa64   :  { %v1628_v27 = vmul.f32 1.442695, %v1625_v26 }
 0xa65   :  { %v1632_v31 = vpop.xlane.xlu0 %1631 }
 0xa66   :  { %4914 = vpow2.f32 %v1628_v27 }
 0xa67   :  { %4916 = vrcp.f32 %v1632_v31 }
 0xa69   :  { %v1641_v32 = vpop.permute.xlu0 %1640 }
 0xa6a   :  { %4605 = vmatpush3.msra.mxu1 %v1641_v32 }
 0xa6b   :  { %4799 = vmatprep.subr.bf16.mxu1 %v4798_v48 }
 0xa70   :  { %v4915_v34 = vpop.eup %4914 }
 0xa71   :  { %v4917_v36 = vpop.eup %4916  ;;  %v1633_v37 = vsel %vm231_vm2, %v4915_v34, 0.0 }
 0xa72   :  { %v1638_v38 = vmul.f32 %v4917_v36, %v4913_v23  ;;  %1634 = vadd.xlane.f32.xlu1 %v1633_v37 }
 0xa74   :  { %4607 = vmatmul.mubr.msk.f32.vlgmr.msra.gmra.mrb[20].mxu1 %vm231_vm2, %v1638_v38 }
 0xa75   :  { %4801 = vmatpush3.bf16.msra.mxu1 %v4798_v48 }
 0xa76   :  { %4803 = vmatprep.subr.bf16.mxu1 %v4802_v51 }
 0xa79   :  { %4805 = vmatpush3.bf16.msra.mxu1 %v4802_v51 }
 0xa83   :  { %1716 = vrot.lane.b32.xlu1 %v5191_v33, %s5725_s28 }
 0xaff   :  { %v1635_v35 = vpop.xlane.xlu1 %1634 }
 0xb00   :  { %4918 = vrcp.f32 %v1635_v35 }
 0xb03   :  { %v1717_v40 = vpop.permute.xlu1 %1716 }
 0xb04   :  { %4610 = vmatpush3.msra.mxu0 %v1717_v40 }
 0xb05   :  { %4614 = vmatprep.subr.mxu0 %v227_v39 }
 0xb0a   :  { %v4919_v41 = vpop.eup %4918 }
 0xb0b   :  { %v1639_v42 = vmul.f32 %v4919_v41, %v4915_v34 }
 0xb0d   :  { %4612 = vmatmul.mubr.msk.f32.vlgmr.msra.gmra.mrb[12].mxu0 %vm231_vm2, %v1639_v42 }
 0xb0e   :  { %4615 = vmatpush3.msra.mxu0 %v227_v39 }
 0xb0f   :  { %4807 = vmatprep.subr.bf16.mxu0 %v4806_v55 }
 0xb47   :  { %v1712_v43 = vpop.f32.mrb[20].mxu1 }
 0xb48   :  { %v4608_v44 = vpop.f32.mrb[21].mxu1  ;;  %4616 = vmatprep.mubr.msk.f32.mxu0 %vm231_vm2, %v1712_v43 }
 0xbe0   :  { %v1788_v45 = vpop.f32.mrb[12].mxu0 }
 0xbe1   :  { %v4613_v33 = vpop.f32.mrb[13].mxu0  ;;  %4617 = vmatmul.mubr.msk.f32.vlgmr.msra.gmra.mrb[6].mxu0 %vm231_vm2, %v1788_v45  ;;  %v4320_v45 = vld [vmem:[%s5762_s4] ss:$0 sm:$0xff]  ;;  %s5770_s4 = smov 72  }
 0xbe2   :  { %4809 = vmatpush3.bf16.msra.mxu0 %v4806_v55  ;;  %v4818_v55 = vpack.c.bf16 %v2048_v54, %v2047_v53 }
 0xbe3   :  { %4811 = vmatprep.subr.bf16.mxu0 %v4810_v57 }
 0xbe6   :  { %4813 = vmatpush3.bf16.msra.mxu0 %v4810_v57 }
 0xbe7   :  { %4815 = vmatprep.subr.bf16.mxu0 %v4814_v60 }
 0xbea   :  { %4817 = vmatpush3.bf16.msra.mxu0 %v4814_v60 }
 0xbeb   :  { %4819 = vmatprep.subr.bf16.mxu0 %v4818_v55 }
 0xbee   :  { %4821 = vmatpush3.bf16.msra.mxu0 %v4818_v55 }
 0xbef   :  { %4670 = vmatprep.subr.mxu0 %v4994_v30 }
 0xcb4   :  { %v4618_v62 = vpop.f32.mrb[6].mxu0 }
 0xcb5   :  { %v1883_v63 = vadd.f32 %v4618_v62, %v4319_v61  ;;  %v1864_v0 = vpop.f32.mrb[7].mxu0 }
 0xcb6   :  { %v1882_v2 = vadd.f32 %v4319_v61, %v1864_v0  ;;  %v2201_v0 = vld [vmem:[%s5707_s15 + $0x8] sm:$0xff] }
 0xcb7   :  { %v1885_v3 = vadd.f32 %v1883_v63, %v5176_v29  ;;  %v2200_v63 = vld [vmem:[%s5707_s15] sm:$0xff] }
 0xcb8   :  { %v1884_v4 = vadd.f32 %v1882_v2, %v5174_v28  ;;  %v4822_v2 = vpack.c.bf16 %v2201_v0, %v2200_v63 }
 0xcb9   :  { %v1893_v5 = vsel %vm142_vm0, %v1885_v3, 0.0 }
 0xcba   :  { %v1894_v1 = vrot.slane %v1893_v5, 4  ;;  %v1886_v6 = vsel %vm142_vm0, %v1884_v4, 0.0  ;;  %4823 = vmatprep.subr.bf16.mxu1 %v4822_v2 }
 0xcbb   :  { %v1887_v7 = vrot.slane %v1886_v6, 4 }
 0xcbc   :  { %v1895_v8 = vadd.f32 %v1894_v1, %v1893_v5  ;;  %v4325_v1 = vld [vmem:[%s5704_s12] ss:$0 sm:$0xff] }
 0xcbd   :  { %v1888_v9 = vadd.f32 %v1887_v7, %v1886_v6 }
 0xcbe   :  { %v1896_v10 = vrot.slane %v1895_v8, 2 }
 0xcbf   :  { %v1889_v11 = vrot.slane %v1888_v9, 2 }
 0xcc0   :  { %v1897_v12 = vadd.f32 %v1896_v10, %v1895_v8 }
 0xcc1   :  { %v1890_v13 = vadd.f32 %v1889_v11, %v1888_v9 }
 0xcc2   :  { %v1898_v14 = vrot.slane %v1897_v12, 1 }
 0xcc3   :  { %v1891_v15 = vrot.slane %v1890_v13, 1 }
 0xcc4   :  { %v1899_v16 = vadd.f32 %v1898_v14, %v1897_v12 }
 0xcc5   :  { %v1892_v17 = vadd.f32 %v1891_v15, %v1890_v13 }
 0xcc6   :  { %v1902_v18 = vmul.f32 0.125, %v1899_v16 }
 0xcc7   :  { %v1901_v29 = vmul.f32 0.125, %v1892_v17 }
 0xcc8   :  { %v1904_v19 = vsub.f32 %v1885_v3, %v1902_v18  ;;  %v2202_v3 = vld [vmem:[%s5707_s15 + $0x10] sm:$0xff] }
 0xcc9   :  { %v1903_v28 = vsub.f32 %v1884_v4, %v1901_v29  ;;  %v2203_v4 = vld [vmem:[%s5707_s15 + $0x18] sm:$0xff] }
 0xcca   :  { %v1906_v20 = vmul.f32 %v1904_v19, %v1904_v19  ;;  %v4826_v5 = vpack.c.bf16 %v2203_v4, %v2202_v3 }
 0xccb   :  { %v1905_v21 = vmul.f32 %v1903_v28, %v1903_v28 }
 0xccc   :  { %v1914_v22 = vsel %vm142_vm0, %v1906_v20, 0.0 }
 0xccd   :  { %v1915_v23 = vrot.slane %v1914_v22, 4  ;;  %v1907_v24 = vsel %vm142_vm0, %v1905_v21, 0.0 }
 0xcce   :  { %v1908_v25 = vrot.slane %v1907_v24, 4 }
 0xccf   :  { %v1916_v26 = vadd.f32 %v1915_v23, %v1914_v22 }
 0xcd0   :  { %v1909_v27 = vadd.f32 %v1908_v25, %v1907_v24 }
 0xcd1   :  { %v1917_v31 = vrot.slane %v1916_v26, 2 }
 0xcd2   :  { %v1910_v32 = vrot.slane %v1909_v27, 2 }
 0xcd3   :  { %v1918_v34 = vadd.f32 %v1917_v31, %v1916_v26 }
 0xcd4   :  { %v1911_v36 = vadd.f32 %v1910_v32, %v1909_v27 }
 0xcd5   :  { %v1919_v37 = vrot.slane %v1918_v34, 1 }
 0xcd6   :  { %v1912_v38 = vrot.slane %v1911_v36, 1 }
 0xcd7   :  { %v1920_v35 = vadd.f32 %v1919_v37, %v1918_v34 }
 0xcd8   :  { %v1913_v39 = vadd.f32 %v1912_v38, %v1911_v36 }
 0xcd9   :  { %v1922_v40 = vmul.f32 0.125, %v1920_v35 }
 0xcda   :  { %v1921_v41 = vmul.f32 0.125, %v1913_v39 }
 0xcdb   :  { %v1924_v42 = vadd.f32 1e-05, %v1922_v40 }
 0xcdc   :  { %v1923_v43 = vadd.f32 1e-05, %v1921_v41 }
 0xcdd   :  { %4920 = vrsqrt.f32 %v1924_v42 }
 0xcde   :  { %4922 = vrsqrt.f32 %v1923_v43 }
 0xce7   :  { %v4921_v44 = vpop.eup %4920 }
 0xce8   :  { %v4923_v33 = vpop.eup %4922  ;;  %v1928_v46 = vmul.f32 %v4921_v44, %v1904_v19 }
 0xce9   :  { %v1927_v47 = vmul.f32 %v4923_v33, %v1903_v28 }
 0xcea   :  { %v1937_v48 = vmul.f32 %v4320_v45, %v1928_v46 }
 0xceb   :  { %v1936_v50 = vmul.f32 %v4320_v45, %v1927_v47 }
 0xcec   :  { %v1946_v52 = vadd.f32 %v4321_v49, %v1937_v48 }
 0xced   :  { %v1945_v51 = vadd.f32 %v4321_v49, %v1936_v50 }
 0xcef   :  { %4627 = vmatprep.mubr.msk.f32.mxu1 %vm142_vm0, %v1945_v51 }
 0xcf0   :  { %4628 = vmatmul.mubr.msk.f32.vlgmr.msra.gmra.mrb[22].mxu1 %vm142_vm0, %v1946_v52 }
 0xcf1   :  { %4825 = vmatpush3.bf16.msra.mxu1 %v4822_v2 }
 0xcf2   :  { %4827 = vmatprep.subr.bf16.mxu1 %v4826_v5 }
 0xcf5   :  { %4829 = vmatpush3.bf16.msra.mxu1 %v4826_v5 }
 0xcf6   :  { %4660 = vmatprep.subr.mxu1 %v4994_v30 }
 0xdc3   :  { %v4629_v57 = vpop.f32.mrb[22].mxu1 }
 0xdc4   :  { %v2036_v58 = vadd.f32 %v4629_v57, %v4322_v56  ;;  %v2030_v59 = vpop.f32.mrb[23].mxu1  ;;  %v4329_v57 = vld [vmem:[%s5706_s14] ss:$0 sm:$0xff]  ;;  %s5765_s14 = smov 64  }
 0xdc5   :  { %v2031_v60 = vadd.f32 %v4322_v56, %v2030_v59 }
 0xdc6   :  { %v2040_v62 = vmax.f32 %v2036_v58, 0.0 }
 0xdc7   :  { %v2039_v61 = vmax.f32 %v2031_v60, 0.0 }
 0xdc9   :  { %4646 = vmatprep.mubr.msk.f32.mxu0 %vm2056_vm3, %v2039_v61  ;;  %v4330_v61 = vld [vmem:[%s5708_s16] ss:$0 sm:$0xff]  ;;  %s5766_s16 = smov 80  }
 0xdca   :  { %4647 = vmatmul.mubr.msk.f32.vlgmr.msra.gmra.mrb[14].mxu0 %vm2056_vm3, %v2040_v62 }
 0xdcb   :  { %4672 = vmatprep.mubr.msk.f32.mxu0 %vm4995_vm1, %v4994_v30 }
 0xe9d   :  { %v4648_v6 = vpop.f32.mrb[14].mxu0 }
 0xe9e   :  { %v2135_v7 = vadd.f32 %v4648_v6, %v4325_v1  ;;  %v2129_v8 = vpop.f32.mrb[15].mxu0 }
 0xe9f   :  { %v2130_v9 = vadd.f32 %v4325_v1, %v2129_v8 }
 0xea0   :  { %v2139_v10 = vadd.f32 %v2135_v7, %v1946_v52  ;;  %v4328_v52 = vld [vmem:[%s5705_s13] ss:$0 sm:$0xff] }
 0xea1   :  { %v2138_v11 = vadd.f32 %v2130_v9, %v1945_v51 }
 0xea2   :  { %v2147_v12 = vsel %vm142_vm0, %v2139_v10, 0.0 }
 0xea3   :  { %v2148_v13 = vrot.slane %v2147_v12, 4  ;;  %v2140_v14 = vsel %vm142_vm0, %v2138_v11, 0.0 }
 0xea4   :  { %v2141_v15 = vrot.slane %v2140_v14, 4 }
 0xea5   :  { %v2149_v16 = vadd.f32 %v2148_v13, %v2147_v12 }
 0xea6   :  { %v2142_v17 = vadd.f32 %v2141_v15, %v2140_v14 }
 0xea7   :  { %v2150_v18 = vrot.slane %v2149_v16, 2 }
 0xea8   :  { %v2143_v29 = vrot.slane %v2142_v17, 2 }
 0xea9   :  { %v2151_v19 = vadd.f32 %v2150_v18, %v2149_v16 }
 0xeaa   :  { %v2144_v28 = vadd.f32 %v2143_v29, %v2142_v17 }
 0xeab   :  { %v2152_v20 = vrot.slane %v2151_v19, 1 }
 0xeac   :  { %v2145_v21 = vrot.slane %v2144_v28, 1 }
 0xead   :  { %v2153_v22 = vadd.f32 %v2152_v20, %v2151_v19 }
 0xeae   :  { %v2146_v23 = vadd.f32 %v2145_v21, %v2144_v28 }
 0xeaf   :  { %v2155_v24 = vmul.f32 0.125, %v2153_v22 }
 0xeb0   :  { %v2154_v25 = vmul.f32 0.125, %v2146_v23 }
 0xeb1   :  { %v2157_v26 = vsub.f32 %v2139_v10, %v2155_v24 }
 0xeb2   :  { %v2156_v27 = vsub.f32 %v2138_v11, %v2154_v25 }
 0xeb3   :  { %v2159_v31 = vmul.f32 %v2157_v26, %v2157_v26 }
 0xeb4   :  { %v2158_v32 = vmul.f32 %v2156_v27, %v2156_v27 }
 0xeb5   :  { %v2167_v34 = vsel %vm142_vm0, %v2159_v31, 0.0 }
 0xeb6   :  { %v2168_v36 = vrot.slane %v2167_v34, 4  ;;  %v2160_v37 = vsel %vm142_vm0, %v2158_v32, 0.0 }
 0xeb7   :  { %v2161_v38 = vrot.slane %v2160_v37, 4 }
 0xeb8   :  { %v2169_v35 = vadd.f32 %v2168_v36, %v2167_v34 }
 0xeb9   :  { %v2162_v39 = vadd.f32 %v2161_v38, %v2160_v37 }
 0xeba   :  { %v2170_v40 = vrot.slane %v2169_v35, 2 }
 0xebb   :  { %v2163_v41 = vrot.slane %v2162_v39, 2 }
 0xebc   :  { %v2171_v42 = vadd.f32 %v2170_v40, %v2169_v35 }
 0xebd   :  { %v2164_v43 = vadd.f32 %v2163_v41, %v2162_v39 }
 0xebe   :  { %v2172_v44 = vrot.slane %v2171_v42, 1 }
 0xebf   :  { %v2165_v45 = vrot.slane %v2164_v43, 1 }
 0xec0   :  { %v2173_v33 = vadd.f32 %v2172_v44, %v2171_v42 }
 0xec1   :  { %v2166_v46 = vadd.f32 %v2165_v45, %v2164_v43 }
 0xec2   :  { %v2175_v47 = vmul.f32 0.125, %v2173_v33 }
 0xec3   :  { %v2174_v48 = vmul.f32 0.125, %v2166_v46 }
 0xec4   :  { %v2177_v49 = vadd.f32 1e-05, %v2175_v47 }
 0xec5   :  { %v2176_v50 = vadd.f32 1e-05, %v2174_v48 }
 0xec6   :  { %4924 = vrsqrt.f32 %v2177_v49 }
 0xec7   :  { %4926 = vrsqrt.f32 %v2176_v50 }
 0xed0   :  { %v4925_v51 = vpop.eup %4924 }
 0xed1   :  { %v4927_v53 = vpop.eup %4926  ;;  %v2181_v54 = vmul.f32 %v4925_v51, %v2157_v26 }
 0xed2   :  { %v2180_v55 = vmul.f32 %v4927_v53, %v2156_v27 }
 0xed3   :  { %v2190_v56 = vmul.f32 %v4328_v52, %v2181_v54 }
 0xed4   :  { %v2189_v58 = vmul.f32 %v4328_v52, %v2180_v55 }
 0xed5   :  { %v5438_v60 = vadd.f32 %v4329_v57, %v2190_v56 }
 0xed6   :  { %v5436_v59 = vadd.f32 %v4329_v57, %v2189_v58 }
 0xed8   :  { %4657 = vmatprep.mubr.msk.f32.mxu1 %vm142_vm0, %v5436_v59 }
 0xed9   :  { %4658 = vmatmul.mubr.msk.f32.vlgmr.msra.gmra.mrb[24].mxu1 %vm142_vm0, %v5438_v60 }
 0xeda   :  { %4662 = vmatprep.mubr.msk.f32.mxu1 %vm4995_vm1, %v4994_v30 }
 0xfac   :  { %v4659_v62 = vpop.f32.mrb[24].mxu1 }
 0xfad   :  { %v5449_v63 = vadd.f32 %v4659_v62, %v4330_v61  ;;  %v2283_v0 = vpop.f32.mrb[25].mxu1 }
 0xfae   :  { %v5451_v2 = vadd.f32 %v4330_v61, %v2283_v0 }
 0xfaf   :  { %2374 = vrot.lane.b32.xlu0 %v5449_v63, %s4996_s10 }
 0xfb0   :  { %2297 = vrot.lane.b32.xlu1 %v5451_v2, %s4996_s10  ;;  %s5767_s10 = smov 112  }
0x1021   :  { %v2375_v4 = vpop.permute.xlu0 %2374 }
0x1022   :  { %v2298_v3 = vpop.permute.xlu1 %2297 }
0x1023   :  { %4661 = vmatpush3.xpose.msk.msra.mxu1 %vm231_vm2, %v2298_v3 }
0x1024   :  { %4665 = vmatprep.subr.mxu1 %v4994_v30 }
0x1026   :  { %4663 = vmatmul.mubr.msk.f32.vlgmr.msra.gmra.mrb[26].mxu1 %vm231_vm2, %v5451_v2 }
0x1027   :  { %4666 = vmatpush3.xpose.msk.msra.mxu1 %vm231_vm2, %v2375_v4  ;;  %4667 = vmatprep.mubr.msk.f32.mxu1 %vm4995_vm1, %v4994_v30 }
0x1028   :  { %4675 = vmatprep.subr.mxu1 %v4994_v30 }
0x102a   :  { %4668 = vmatmul.mubr.msk.f32.vlgmr.msra.gmra.mrb[28].mxu1 %vm231_vm2, %v5449_v63 }
0x102b   :  { %4677 = vmatprep.mubr.msk.f32.mxu1 %vm4995_vm1, %v4994_v30 }
0x10f9   :  { %v2369_v5 = vpop.f32.mrb[26].mxu1 }
0x10fa   :  { %v4664_v1 = vpop.f32.mrb[27].mxu1  ;;  %v2450_v14 = vsel %vm231_vm2, %v2369_v5, -inf }
0x10fd   :  { %v2446_v6 = vpop.f32.mrb[28].mxu1 }
0x10fe   :  { %v4669_v7 = vpop.f32.mrb[29].mxu1  ;;  %v2453_v8 = vsel %vm231_vm2, %v2446_v6, -inf }
0x10ff   :  { %2454 = vmax.xlane.f32.xlu1 %v2453_v8 }
0x1110   :  { %2704 = vrot.lane.b32.xlu1 %v5449_v63, %s4997_s29 }
0x1114   :  { %2702 = vrot.lane.b32.xlu1 %v5449_v63, %s4998_s1 }
0x118c   :  { %v2455_v9 = vpop.xlane.xlu1 %2454 }
0x118d   :  { %v2457_v10 = vsub.f32 %v2446_v6, %v2455_v9 }
0x118f   :  { %v2460_v11 = vmul.f32 1.442695, %v2457_v10 }
0x1190   :  { %v2705_v18 = vpop.permute.xlu1 %2704 }
0x1191   :  { %4928 = vpow2.f32 %v2460_v11 }
0x1194   :  { %v2703_v19 = vpop.permute.xlu1 %2702 }
0x119b   :  { %v4929_v12 = vpop.eup %4928 }
0x119c   :  { %v2465_v13 = vsel %vm231_vm2, %v4929_v12, 0.0 }
0x119d   :  { %2466 = vadd.xlane.f32.xlu0 %v2465_v13 }
0x11b3   :  { %2548 = vrot.lane.b32.xlu0 %v5449_v63, %s5765_s14 }
0x11d2   :  { %2451 = vmax.xlane.f32.xlu0 %v2450_v14  ;;  %v2293_v14 = vld [vmem:[%s5709_s17 + $0x8] sm:$0xff] }
0x11e8   :  { %2472 = vrot.lane.b32.xlu0 %v5451_v2, %s5765_s14 }
0x11ec   :  { %2624 = vrot.lane.b32.xlu0 %v5451_v2, %s4998_s1  ;;  %s5769_s1 = smov 48  }
0x122a   :  { %v2467_v15 = vpop.xlane.xlu0 %2466 }
0x122b   :  { %4930 = vrcp.f32 %v2467_v15  ;;  %v2292_v15 = vld [vmem:[%s5709_s17] sm:$0xff] }
0x122e   :  { %v2549_v16 = vpop.permute.xlu0 %2548 }
0x122f   :  { %4676 = vmatpush3.msra.mxu1 %v2549_v16 }
0x1230   :  { %4685 = vmatprep.subr.mxu1 %v4994_v30 }
0x1235   :  { %v4931_v17 = vpop.eup %4930 }
0x1236   :  { %v2471_v29 = vmul.f32 %v4931_v17, %v4929_v12 }
0x1238   :  { %4678 = vmatmul.mubr.msk.f32.vlgmr.msra.gmra.mrb[30].mxu1 %vm231_vm2, %v2471_v29 }
0x1239   :  { %4686 = vmatpush3.xpose.msk.msra.mxu1 %vm231_vm2, %v2705_v18  ;;  %4687 = vmatprep.mubr.msk.f32.mxu1 %vm4995_vm1, %v4994_v30 }
0x123a   :  { %4695 = vmatprep.subr.mxu1 %v4994_v30 }
0x123c   :  { %4688 = vmatmul.mubr.msk.f32.vlgmr.msra.gmra.mrb[32].mxu1 %vm231_vm2, %v2703_v19 }
0x123d   :  { %4697 = vmatprep.mubr.msk.f32.mxu1 %vm4995_vm1, %v4994_v30 }
0x125f   :  { %v2452_v28 = vpop.xlane.xlu0 %2451 }
0x1260   :  { %v2456_v20 = vsub.f32 %v2369_v5, %v2452_v28 }
0x1262   :  { %v2458_v21 = vmul.f32 1.442695, %v2456_v20 }
0x1263   :  { %v2473_v22 = vpop.permute.xlu0 %2472 }
0x1264   :  { %4932 = vpow2.f32 %v2458_v21  ;;  %4671 = vmatpush3.msra.mxu0 %v2473_v22 }
0x1265   :  { %4680 = vmatprep.subr.mxu0 %v4994_v30 }
0x1267   :  { %v2625_v36 = vpop.permute.xlu0 %2624 }
0x126e   :  { %v4933_v23 = vpop.eup %4932 }
0x126f   :  { %v2462_v24 = vsel %vm231_vm2, %v4933_v23, 0.0 }
0x1270   :  { %2463 = vadd.xlane.f32.xlu1 %v2462_v24 }
0x1281   :  { %2626 = vrot.lane.b32.xlu1 %v5451_v2, %s4997_s29  ;;  %s5768_s29 = smov 56  }
0x12fd   :  { %v2464_v25 = vpop.xlane.xlu1 %2463 }
0x12fe   :  { %4934 = vrcp.f32 %v2464_v25 }
0x1301   :  { %v2627_v31 = vpop.permute.xlu1 %2626 }
0x1308   :  { %v4935_v26 = vpop.eup %4934 }
0x1309   :  { %v2470_v27 = vmul.f32 %v4935_v26, %v4933_v23 }
0x130b   :  { %4673 = vmatmul.mubr.msk.f32.vlgmr.msra.gmra.mrb[16].mxu0 %vm231_vm2, %v2470_v27  ;;  %v5496_v32 = vpop.f32.mrb[30].mxu1 }
0x130c   :  { %4681 = vmatpush3.xpose.msk.msra.mxu0 %vm231_vm2, %v2627_v31  ;;  %v4679_v34 = vpop.f32.mrb[31].mxu1  ;;  %4682 = vmatprep.mubr.msk.f32.mxu0 %vm4995_vm1, %v4994_v30  ;;  %v2294_v31 = vld [vmem:[%s5709_s17 + $0x10] sm:$0xff] }
0x130d   :  { %4690 = vmatprep.subr.mxu0 %v4994_v30 }
0x130f   :  { %4683 = vmatmul.mubr.msk.f32.vlgmr.msra.gmra.mrb[18].mxu0 %vm231_vm2, %v2625_v36  ;;  %v2776_v37 = vpop.f32.mrb[32].mxu1 }
0x1310   :  { %v4689_v38 = vpop.f32.mrb[33].mxu1  ;;  %v2783_v35 = vsel %vm231_vm2, %v2776_v37, -inf  ;;  %4692 = vmatprep.mubr.msk.f32.mxu0 %vm4995_vm1, %v4994_v30 }
0x1311   :  { %2784 = vmax.xlane.f32.xlu1 %v2783_v35 }
0x1322   :  { %3118 = vrot.lane.b32.xlu1 %v5451_v2, %s5766_s16 }
0x1326   :  { %3116 = vrot.lane.b32.xlu1 %v5451_v2, %s5767_s10 }
0x132a   :  { %3194 = vrot.lane.b32.xlu1 %v5449_v63, %s5767_s10 }
0x139e   :  { %v2785_v39 = vpop.xlane.xlu1 %2784 }
0x139f   :  { %v2787_v40 = vsub.f32 %v2776_v37, %v2785_v39 }
0x13a1   :  { %v2790_v41 = vmul.f32 1.442695, %v2787_v40 }
0x13a2   :  { %v3119_v50 = vpop.permute.xlu1 %3118 }
0x13a3   :  { %4936 = vpow2.f32 %v2790_v41 }
0x13a6   :  { %v3117_v53 = vpop.permute.xlu1 %3116 }
0x13aa   :  { %v3195_v55 = vpop.permute.xlu1 %3194 }
0x13ad   :  { %v4937_v42 = vpop.eup %4936 }
0x13ae   :  { %v2795_v43 = vsel %vm231_vm2, %v4937_v42, 0.0 }
0x13af   :  { %2796 = vadd.xlane.f32.xlu0 %v2795_v43 }
0x13c5   :  { %2878 = vrot.lane.b32.xlu0 %v5449_v63, %s5768_s29 }
0x13c9   :  { %3196 = vrot.lane.b32.xlu0 %v5449_v63, %s5766_s16 }
0x13de   :  { %v5517_v44 = vpop.f32.mrb[16].mxu0 }
0x13df   :  { %v4674_v45 = vpop.f32.mrb[17].mxu0 }
0x13e2   :  { %v2698_v33 = vpop.f32.mrb[18].mxu0 }
0x13e3   :  { %v4684_v46 = vpop.f32.mrb[19].mxu0  ;;  %v2780_v47 = vsel %vm231_vm2, %v2698_v33, -inf }
0x13e8   :  { %2781 = vmax.xlane.f32.xlu0 %v2780_v47 }
0x13fe   :  { %2802 = vrot.lane.b32.xlu0 %v5451_v2, %s5768_s29 }
0x1402   :  { %3370 = vrot.lane.b32.xlu0 %v5449_v63, %s5769_s1 }
0x1406   :  { %3531 = vrot.lane.b32.xlu0 %v5451_v2, %s5770_s4 }
0x140a   :  { %3609 = vrot.lane.b32.xlu0 %v5449_v63, %s5770_s4  ;;  %s5007_s4 = smov [#allocation2]  }
0x140e   :  { %3529 = vrot.lane.b32.xlu0 %v5451_v2, %s5771_s8 }
0x1412   :  { %3607 = vrot.lane.b32.xlu0 %v5449_v63, %s5771_s8  ;;  %s4272_s8 = sshll.u32 %s5007_s4, 4  ;;  %s4273_s8 = int_to_ptr.vmem [resolvable:$true] %s4272_s8 }
0x1413   :  { %s4968_s3 = scalar_lea.vmem %s4273_s8, 256  ;;  %p4973_p1 = scmp.lt.s32.totalorder %s4273_s8, %s4273_s8 }
0x1414   :  { %p4969_p0 = scmp.ne.s32.totalorder %s4273_s8, %s4968_s3  ;;  %p4974_p2 = scmp.lt.s32.totalorder %s4968_s3, %s4968_s3 }
0x1416   :  { %p4975_p3 = por %p4974_p2, %p4973_p1 }
0x1418   :  { %p4976_p4 = pnand %p4975_p3, %p4969_p0 }
0x143c   :  { %v2797_v48 = vpop.xlane.xlu0 %2796 }
0x143d   :  { %4938 = vrcp.f32 %v2797_v48 }
0x1440   :  { %v2879_v49 = vpop.permute.xlu0 %2878 }
0x1441   :  { %4696 = vmatpush3.msra.mxu1 %v2879_v49 }
0x1442   :  { %4710 = vmatprep.subr.mxu1 %v4994_v30 }
0x1444   :  { %v3197_v54 = vpop.permute.xlu0 %3196 }
0x1447   :  { %v4939_v51 = vpop.eup %4938 }
0x1448   :  { %v2801_v52 = vmul.f32 %v4939_v51, %v4937_v42 }
0x144a   :  { %4698 = vmatmul.mubr.msk.f32.vlgmr.msra.gmra.mrb[34].mxu1 %vm231_vm2, %v2801_v52 }
0x144b   :  { %4711 = vmatpush3.xpose.msk.msra.mxu1 %vm231_vm2, %v3119_v50  ;;  %4712 = vmatprep.mubr.msk.f32.mxu1 %vm4995_vm1, %v4994_v30 }
0x144c   :  { %4715 = vmatprep.subr.mxu1 %v4994_v30 }
0x144e   :  { %4713 = vmatmul.mubr.msk.f32.vlgmr.msra.gmra.mrb[36].mxu1 %vm231_vm2, %v3117_v53 }
0x144f   :  { %4716 = vmatpush3.xpose.msk.msra.mxu1 %vm231_vm2, %v3197_v54  ;;  %4717 = vmatprep.mubr.msk.f32.mxu1 %vm4995_vm1, %v4994_v30 }
0x1450   :  { %4725 = vmatprep.subr.mxu1 %v4994_v30 }
0x1452   :  { %4718 = vmatmul.mubr.msk.f32.vlgmr.msra.gmra.mrb[38].mxu1 %vm231_vm2, %v3195_v55 }
0x1453   :  { %4727 = vmatprep.mubr.msk.f32.mxu1 %vm4995_vm1, %v4994_v30 }
0x1475   :  { %v2782_v56 = vpop.xlane.xlu0 %2781 }
0x1476   :  { %v2786_v57 = vsub.f32 %v2698_v33, %v2782_v56 }
0x1478   :  { %v2788_v58 = vmul.f32 1.442695, %v2786_v57 }
0x1479   :  { %v2803_v61 = vpop.permute.xlu0 %2802 }
0x147a   :  { %4940 = vpow2.f32 %v2788_v58  ;;  %4691 = vmatpush3.msra.mxu0 %v2803_v61 }
0x147b   :  { %4700 = vmatprep.subr.mxu0 %v2293_v14 }
0x147d   :  { %v3371_v62 = vpop.permute.xlu0 %3370 }
0x147e   :  { %4726 = vmatpush3.msra.mxu1 %v3371_v62 }
0x147f   :  { %4735 = vmatprep.subr.mxu1 %v4994_v30 }
0x1481   :  { %v3532_v36 = vpop.permute.xlu0 %3531 }
0x1484   :  { %v4941_v0 = vpop.eup %4940 }
0x1485   :  { %v2792_v3 = vsel %vm231_vm2, %v4941_v0, 0.0  ;;  %v3610_v35 = vpop.permute.xlu0 %3609 }
0x1486   :  { %2793 = vadd.xlane.f32.xlu1 %v2792_v3 }
0x1489   :  { %v3530_v40 = vpop.permute.xlu0 %3529 }
0x148d   :  { %v3608_v45 = vpop.permute.xlu0 %3607 }
0x1513   :  { %v2794_v4 = vpop.xlane.xlu1 %2793 }
0x1514   :  { %4942 = vrcp.f32 %v2794_v4 }
0x151d   :  { %v2950_v5 = vpop.f32.mrb[34].mxu1 }
0x151e   :  { %v4943_v1 = vpop.eup %4942  ;;  %v4699_v6 = vpop.f32.mrb[35].mxu1 }
0x151f   :  { %v2800_v7 = vmul.f32 %v4943_v1, %v4941_v0 }
0x1521   :  { %4693 = vmatmul.mubr.msk.f32.vlgmr.msra.gmra.mrb[20].mxu0 %vm231_vm2, %v2800_v7  ;;  %v3190_v8 = vpop.f32.mrb[36].mxu1 }
0x1522   :  { %v4714_v9 = vpop.f32.mrb[37].mxu1  ;;  %v3272_v10 = vsel %vm231_vm2, %v3190_v8, -inf  ;;  %4701 = vmatpush3.msra.mxu0 %v2293_v14  ;;  %v4015_v14 = vld [vmem:[%s5713_s21 + $0x10] sm:$0xff] }
0x1523   :  { %3273 = vmax.xlane.f32.xlu1 %v3272_v10  ;;  %4705 = vmatprep.subr.mxu0 %v2292_v15 }
0x1525   :  { %v3268_v11 = vpop.f32.mrb[38].mxu1 }
0x1526   :  { %v4719_v12 = vpop.f32.mrb[39].mxu1  ;;  %v3275_v13 = vsel %vm231_vm2, %v3268_v11, -inf }
0x1527   :  { %3276 = vmax.xlane.f32.xlu1 %v3275_v13  ;;  %v4014_v12 = vld [vmem:[%s5713_s21 + $0x8] sm:$0xff] }
0x15b0   :  { %v3274_v16 = vpop.xlane.xlu1 %3273 }
0x15b1   :  { %v3278_v17 = vsub.f32 %v3190_v8, %v3274_v16 }
0x15b3   :  { %v3280_v18 = vmul.f32 1.442695, %v3278_v17  ;;  %v4107_v17 = vld [vmem:[%s5715_s23] sm:$0xff] }
0x15b4   :  { %v3277_v29 = vpop.xlane.xlu1 %3276 }
0x15b5   :  { %4944 = vpow2.f32 %v3280_v18  ;;  %v3279_v19 = vsub.f32 %v3268_v11, %v3277_v29  ;;  %v4013_v11 = vld [vmem:[%s5713_s21] sm:$0xff]  ;;  %v4108_v18 = vld [vmem:[%s5715_s23 + $0x8] sm:$0xff]  ;;  %v4109_v29 = vld [vmem:[%s5715_s23 + $0x10] sm:$0xff] }
0x15b6   :  { %v4830_v13 = vpack.c.bf16 %v4014_v12, %v4013_v11 }
0x15b7   :  { %v3282_v28 = vmul.f32 1.442695, %v3279_v19  ;;  %v4838_v19 = vpack.c.bf16 %v4108_v18, %v4107_v17  ;;  %v4113_v17 = vld [vmem:[%s5715_s23 + $0x30] sm:$0xff]  ;;  %v4114_v18 = vld [vmem:[%s5715_s23 + $0x38] sm:$0xff] }
0x15b9   :  { %4946 = vpow2.f32 %v3282_v28  ;;  %v4110_v28 = vld [vmem:[%s5715_s23 + $0x18] sm:$0xff] }
0x15bf   :  { %v4945_v20 = vpop.eup %4944 }
0x15c0   :  { %v3284_v21 = vsel %vm231_vm2, %v4945_v20, 0.0 }
0x15c1   :  { %3285 = vadd.xlane.f32.xlu1 %v3284_v21  ;;  %v4111_v21 = vld [vmem:[%s5715_s23 + $0x20] sm:$0xff] }
0x15c3   :  { %v4947_v22 = vpop.eup %4946 }
0x15c4   :  { %v3287_v23 = vsel %vm231_vm2, %v4947_v22, 0.0 }
0x15c5   :  { %3288 = vadd.xlane.f32.xlu1 %v3287_v23 }
0x15d6   :  { %3294 = vrot.lane.b32.xlu1 %v5451_v2, %s5769_s1 }
0x15f4   :  { %v2874_v24 = vpop.f32.mrb[20].mxu0 }
0x15f5   :  { %v4694_v25 = vpop.f32.mrb[21].mxu0  ;;  %4702 = vmatprep.mubr.msk.f32.mxu0 %vm231_vm2, %v2874_v24  ;;  %v4365_v24 = vld [vmem:[%s5710_s18] ss:$0 sm:$0xff] }
0x15f6   :  { %4703 = vmatmul.mubr.msk.f32.vlgmr.msra.gmra.mrb[22].mxu0 %vm231_vm2, %v2950_v5  ;;  %v2295_v5 = vld [vmem:[%s5709_s17 + $0x18] sm:$0xff] }
0x15f7   :  { %4707 = vmatprep.mubr.msk.f32.mxu0 %vm231_vm2, %v5517_v44  ;;  %4706 = vmatpush3.msra.mxu0 %v2292_v15  ;;  %v4016_v15 = vld [vmem:[%s5713_s21 + $0x18] sm:$0xff] }
0x15f8   :  { %4720 = vmatprep.subr.mxu0 %v4994_v30  ;;  %v4834_v16 = vpack.c.bf16 %v4016_v15, %v4015_v14 }
0x15fe   :  { %4708 = vmatmul.mubr.msk.f32.vlgmr.msra.gmra.mrb[22].mxu0 %vm231_vm2, %v5496_v32 }
0x15ff   :  { %4722 = vmatprep.mubr.msk.f32.mxu0 %vm4995_vm1, %v4994_v30 }
0x164e   :  { %v3286_v26 = vpop.xlane.xlu1 %3285 }
0x164f   :  { %4948 = vrcp.f32 %v3286_v26 }
0x1652   :  { %v3289_v27 = vpop.xlane.xlu1 %3288 }
0x1653   :  { %4950 = vrcp.f32 %v3289_v27 }
0x1656   :  { %v3295_v34 = vpop.permute.xlu1 %3294 }
0x1657   :  { %4721 = vmatpush3.msra.mxu0 %v3295_v34 }
0x1658   :  { %4730 = vmatprep.subr.mxu0 %v2294_v31 }
0x1659   :  { %v4949_v37 = vpop.eup %4948 }
0x165a   :  { %v3292_v38 = vmul.f32 %v4949_v37, %v4945_v20  ;;  %v4842_v20 = vpack.c.bf16 %v4110_v28, %v4109_v29  ;;  %v4850_v29 = vpack.c.bf16 %v4114_v18, %v4113_v17 }
0x165c   :  { %4723 = vmatmul.mubr.msk.f32.vlgmr.msra.gmra.mrb[24].mxu0 %vm231_vm2, %v3292_v38 }
0x165d   :  { %v4951_v32 = vpop.eup %4950  ;;  %4731 = vmatpush3.msra.mxu0 %v2294_v31 }
0x165e   :  { %v3293_v39 = vmul.f32 %v4951_v32, %v4947_v22  ;;  %4740 = vmatprep.subr.mxu0 %v4994_v30  ;;  %v4112_v22 = vld [vmem:[%s5715_s23 + $0x28] sm:$0xff] }
0x165f   :  { %v4846_v23 = vpack.c.bf16 %v4112_v22, %v4111_v21 }
0x1660   :  { %4728 = vmatmul.mubr.msk.f32.vlgmr.msra.gmra.mrb[40].mxu1 %vm231_vm2, %v3293_v39 }
0x1661   :  { %4736 = vmatpush3.xpose.msk.msra.mxu1 %vm231_vm2, %v3532_v36  ;;  %4737 = vmatprep.mubr.msk.f32.mxu1 %vm4995_vm1, %v4994_v30 }
0x1662   :  { %4745 = vmatprep.subr.mxu1 %v4994_v30 }
0x1664   :  { %4738 = vmatmul.mubr.msk.f32.vlgmr.msra.gmra.mrb[42].mxu1 %vm231_vm2, %v3530_v40 }
0x1665   :  { %4747 = vmatprep.mubr.msk.f32.mxu1 %vm4995_vm1, %v4994_v30 }
0x172f   :  { %v3366_v41 = vpop.f32.mrb[24].mxu0 }
0x1730   :  { %v4724_v42 = vpop.f32.mrb[25].mxu0  ;;  %4732 = vmatprep.mubr.msk.f32.mxu0 %vm231_vm2, %v3366_v41 }
0x1733   :  { %v3442_v43 = vpop.f32.mrb[40].mxu1 }
0x1734   :  { %v4729_v44 = vpop.f32.mrb[41].mxu1  ;;  %4733 = vmatmul.mubr.msk.f32.vlgmr.msra.gmra.mrb[22].mxu0 %vm231_vm2, %v3442_v43 }
0x1735   :  { %4741 = vmatpush3.xpose.msk.msra.mxu0 %vm231_vm2, %v3610_v35  ;;  %4742 = vmatprep.mubr.msk.f32.mxu0 %vm4995_vm1, %v4994_v30 }
0x1736   :  { %4750 = vmatprep.subr.mxu0 %v4994_v30 }
0x1737   :  { %v3603_v33 = vpop.f32.mrb[42].mxu1 }
0x1738   :  { %v4739_v46 = vpop.f32.mrb[43].mxu1  ;;  %4743 = vmatmul.mubr.msk.f32.vlgmr.msra.gmra.mrb[26].mxu0 %vm231_vm2, %v3608_v45  ;;  %v3685_v47 = vsel %vm231_vm2, %v3603_v33, -inf }
0x1739   :  { %3686 = vmax.xlane.f32.xlu1 %v3685_v47  ;;  %4752 = vmatprep.mubr.msk.f32.mxu0 %vm4995_vm1, %v4994_v30 }
0x17c6   :  { %v3687_v48 = vpop.xlane.xlu1 %3686 }
0x17c7   :  { %v3691_v49 = vsub.f32 %v3603_v33, %v3687_v48 }
0x17c9   :  { %v3693_v50 = vmul.f32 1.442695, %v3691_v49 }
0x17cb   :  { %4952 = vpow2.f32 %v3693_v50 }
0x17d5   :  { %v4953_v54 = vpop.eup %4952 }
0x17d6   :  { %v3697_v55 = vsel %vm231_vm2, %v4953_v54, 0.0 }
0x180b   :  { %v3681_v51 = vpop.f32.mrb[26].mxu0 }
0x180c   :  { %v4744_v52 = vpop.f32.mrb[27].mxu0  ;;  %v3688_v53 = vsel %vm231_vm2, %v3681_v51, -inf }
0x180d   :  { %3689 = vmax.xlane.f32.xlu0 %v3688_v53 }
0x1811   :  { %3698 = vadd.xlane.f32.xlu0 %v3697_v55 }
0x1827   :  { %3707 = vrot.lane.b32.xlu0 %v5451_v2, %s5772_s9 }
0x189a   :  { %v3690_v56 = vpop.xlane.xlu0 %3689 }
0x189b   :  { %v3692_v57 = vsub.f32 %v3681_v51, %v3690_v56 }
0x189d   :  { %v3695_v58 = vmul.f32 1.442695, %v3692_v57 }
0x189e   :  { %v3699_v30 = vpop.xlane.xlu0 %3698 }
0x189f   :  { %4954 = vpow2.f32 %v3695_v58 }
0x18a0   :  { %4956 = vrcp.f32 %v3699_v30 }
0x18a2   :  { %v3708_v61 = vpop.permute.xlu0 %3707 }
0x18a3   :  { %4746 = vmatpush3.msra.mxu1 %v3708_v61 }
0x18a4   :  { %4831 = vmatprep.subr.bf16.mxu1 %v4830_v13 }
0x18a9   :  { %v4955_v62 = vpop.eup %4954 }
0x18aa   :  { %v4957_v0 = vpop.eup %4956  ;;  %v3700_v3 = vsel %vm231_vm2, %v4955_v62, 0.0 }
0x18ab   :  { %v3705_v4 = vmul.f32 %v4957_v0, %v4953_v54  ;;  %3701 = vadd.xlane.f32.xlu1 %v3700_v3 }
0x18ad   :  { %4748 = vmatmul.mubr.msk.f32.vlgmr.msra.gmra.mrb[44].mxu1 %vm231_vm2, %v3705_v4 }
0x18ae   :  { %4833 = vmatpush3.bf16.msra.mxu1 %v4830_v13  ;;  %v4367_v13 = vld [vmem:[%s5712_s20] ss:$0 sm:$0xff] }
0x18af   :  { %4835 = vmatprep.subr.bf16.mxu1 %v4834_v16 }
0x18b2   :  { %4837 = vmatpush3.bf16.msra.mxu1 %v4834_v16 }
0x18bc   :  { %3783 = vrot.lane.b32.xlu1 %v5449_v63, %s5772_s9 }
0x1938   :  { %v3702_v2 = vpop.xlane.xlu1 %3701 }
0x1939   :  { %4958 = vrcp.f32 %v3702_v2 }
0x193c   :  { %v3784_v1 = vpop.permute.xlu1 %3783 }
0x193d   :  { %4751 = vmatpush3.msra.mxu0 %v3784_v1 }
0x193e   :  { %4755 = vmatprep.subr.mxu0 %v2295_v5 }
0x1943   :  { %v4959_v6 = vpop.eup %4958 }
0x1944   :  { %v3706_v7 = vmul.f32 %v4959_v6, %v4955_v62 }
0x1946   :  { %4753 = vmatmul.mubr.msk.f32.vlgmr.msra.gmra.mrb[28].mxu0 %vm231_vm2, %v3706_v7 }
0x1947   :  { %4756 = vmatpush3.msra.mxu0 %v2295_v5 }
0x1948   :  { %4839 = vmatprep.subr.bf16.mxu0 %v4838_v19 }
0x1980   :  { %v3779_v8 = vpop.f32.mrb[44].mxu1 }
0x1981   :  { %v4749_v9 = vpop.f32.mrb[45].mxu1  ;;  %4757 = vmatprep.mubr.msk.f32.mxu0 %vm231_vm2, %v3779_v8 }
0x1982   :  { %v4366_v9 = vld [vmem:[%s5711_s19] ss:$0 sm:$0xff] }
0x1a19   :  { %v3855_v10 = vpop.f32.mrb[28].mxu0 }
0x1a1a   :  { %v4754_v63 = vpop.f32.mrb[29].mxu0  ;;  %4758 = vmatmul.mubr.msk.f32.vlgmr.msra.gmra.mrb[22].mxu0 %vm231_vm2, %v3855_v10 }
0x1a1b   :  { %4841 = vmatpush3.bf16.msra.mxu0 %v4838_v19  ;;  %v4368_v19 = vld [vmem:[%s5714_s22] ss:$0 sm:$0xff] }
0x1a1c   :  { %4843 = vmatprep.subr.bf16.mxu0 %v4842_v20 }
0x1a1f   :  { %4845 = vmatpush3.bf16.msra.mxu0 %v4842_v20 }
0x1a20   :  { %4847 = vmatprep.subr.bf16.mxu0 %v4846_v23 }
0x1a23   :  { %4849 = vmatpush3.bf16.msra.mxu0 %v4846_v23 }
0x1a24   :  { %4851 = vmatprep.subr.bf16.mxu0 %v4850_v29 }
0x1a27   :  { %4853 = vmatpush3.bf16.msra.mxu0 %v4850_v29 }
0x1aed   :  { %v4759_v25 = vpop.f32.mrb[22].mxu0 }
0x1aee   :  { %v3950_v26 = vadd.f32 %v4759_v25, %v4365_v24  ;;  %v3931_v27 = vpop.f32.mrb[23].mxu0  ;;  %v4371_v25 = vld [vmem:[%s5716_s24] ss:$0 sm:$0xff] }
0x1aef   :  { %v3949_v31 = vadd.f32 %v4365_v24, %v3931_v27 }
0x1af0   :  { %v3952_v34 = vadd.f32 %v3950_v26, %v5438_v60 }
0x1af1   :  { %v3951_v36 = vadd.f32 %v3949_v31, %v5436_v59 }
0x1af2   :  { %v3960_v37 = vsel %vm142_vm0, %v3952_v34, 0.0 }
0x1af3   :  { %v3961_v38 = vrot.slane %v3960_v37, 4  ;;  %v3953_v32 = vsel %vm142_vm0, %v3951_v36, 0.0 }
0x1af4   :  { %v3954_v35 = vrot.slane %v3953_v32, 4 }
0x1af5   :  { %v3962_v39 = vadd.f32 %v3961_v38, %v3960_v37 }
0x1af6   :  { %v3955_v40 = vadd.f32 %v3954_v35, %v3953_v32 }
0x1af7   :  { %v3963_v41 = vrot.slane %v3962_v39, 2 }
0x1af8   :  { %v3956_v42 = vrot.slane %v3955_v40, 2 }
0x1af9   :  { %v3964_v43 = vadd.f32 %v3963_v41, %v3962_v39 }
0x1afa   :  { %v3957_v44 = vadd.f32 %v3956_v42, %v3955_v40 }
0x1afb   :  { %v3965_v45 = vrot.slane %v3964_v43, 1 }
0x1afc   :  { %v3958_v33 = vrot.slane %v3957_v44, 1 }
0x1afd   :  { %v3966_v46 = vadd.f32 %v3965_v45, %v3964_v43 }
0x1afe   :  { %v3959_v47 = vadd.f32 %v3958_v33, %v3957_v44 }
0x1aff   :  { %v3968_v48 = vmul.f32 0.125, %v3966_v46 }
0x1b00   :  { %v3967_v60 = vmul.f32 0.125, %v3959_v47 }
0x1b01   :  { %v3970_v49 = vsub.f32 %v3952_v34, %v3968_v48 }
0x1b02   :  { %v3969_v59 = vsub.f32 %v3951_v36, %v3967_v60 }
0x1b03   :  { %v3972_v50 = vmul.f32 %v3970_v49, %v3970_v49 }
0x1b04   :  { %v3971_v51 = vmul.f32 %v3969_v59, %v3969_v59 }
0x1b05   :  { %v3980_v52 = vsel %vm142_vm0, %v3972_v50, 0.0 }
0x1b06   :  { %v3981_v53 = vrot.slane %v3980_v52, 4  ;;  %v3973_v54 = vsel %vm142_vm0, %v3971_v51, 0.0 }
0x1b07   :  { %v3974_v55 = vrot.slane %v3973_v54, 4 }
0x1b08   :  { %v3982_v56 = vadd.f32 %v3981_v53, %v3980_v52 }
0x1b09   :  { %v3975_v57 = vadd.f32 %v3974_v55, %v3973_v54 }
0x1b0a   :  { %v3983_v58 = vrot.slane %v3982_v56, 2 }
0x1b0b   :  { %v3976_v30 = vrot.slane %v3975_v57, 2 }
0x1b0c   :  { %v3984_v61 = vadd.f32 %v3983_v58, %v3982_v56 }
0x1b0d   :  { %v3977_v62 = vadd.f32 %v3976_v30, %v3975_v57 }
0x1b0e   :  { %v3985_v0 = vrot.slane %v3984_v61, 1 }
0x1b0f   :  { %v3978_v3 = vrot.slane %v3977_v62, 1 }
0x1b10   :  { %v3986_v4 = vadd.f32 %v3985_v0, %v3984_v61 }
0x1b11   :  { %v3979_v2 = vadd.f32 %v3978_v3, %v3977_v62 }
0x1b12   :  { %v3988_v5 = vmul.f32 0.125, %v3986_v4 }
0x1b13   :  { %v3987_v1 = vmul.f32 0.125, %v3979_v2 }
0x1b14   :  { %v3990_v6 = vadd.f32 1e-05, %v3988_v5 }
0x1b15   :  { %v3989_v7 = vadd.f32 1e-05, %v3987_v1 }
0x1b16   :  { %4960 = vrsqrt.f32 %v3990_v6 }
0x1b17   :  { %4962 = vrsqrt.f32 %v3989_v7 }
0x1b20   :  { %v4961_v8 = vpop.eup %4960 }
0x1b21   :  { %v4963_v10 = vpop.eup %4962  ;;  %v3994_v63 = vmul.f32 %v4961_v8, %v3970_v49 }
0x1b22   :  { %v3993_v11 = vmul.f32 %v4963_v10, %v3969_v59  ;;  %v4374_v10 = vld [vmem:[%s5717_s25] ss:$0 sm:$0xff] }
0x1b23   :  { %v4003_v12 = vmul.f32 %v4366_v9, %v3994_v63 }
0x1b24   :  { %v4002_v14 = vmul.f32 %v4366_v9, %v3993_v11 }
0x1b25   :  { %v4012_v16 = vadd.f32 %v4367_v13, %v4003_v12 }
0x1b26   :  { %v4011_v15 = vadd.f32 %v4367_v13, %v4002_v14  ;;  %v4375_v13 = vld [vmem:[%s5718_s26] ss:$0 sm:$0xff] }
0x1b28   :  { %4768 = vmatprep.mubr.msk.f32.mxu1 %vm142_vm0, %v4011_v15 }
0x1b29   :  { %4769 = vmatmul.mubr.msk.f32.vlgmr.msra.gmra.mrb[46].mxu1 %vm142_vm0, %v4012_v16 }
0x1bfc   :  { %v4770_v28 = vpop.f32.mrb[46].mxu1 }
0x1bfd   :  { %v4102_v20 = vadd.f32 %v4770_v28, %v4368_v19  ;;  %v4096_v21 = vpop.f32.mrb[47].mxu1 }
0x1bfe   :  { %v4097_v22 = vadd.f32 %v4368_v19, %v4096_v21 }
0x1bff   :  { %v4106_v24 = vmax.f32 %v4102_v20, 0.0 }
0x1c00   :  { %v4105_v23 = vmax.f32 %v4097_v22, 0.0 }
0x1c02   :  { %4787 = vmatprep.mubr.msk.f32.mxu0 %vm2056_vm3, %v4105_v23 }
0x1c03   :  { %4788 = vmatmul.mubr.msk.f32.vlgmr.msra.gmra.mrb[30].mxu0 %vm2056_vm3, %v4106_v24 }
0x1cd6   :  { %v4789_v26 = vpop.f32.mrb[30].mxu0 }
0x1cd7   :  { %v4200_v27 = vadd.f32 %v4789_v26, %v4371_v25  ;;  %v4194_v31 = vpop.f32.mrb[31].mxu0 }
0x1cd8   :  { %v4195_v34 = vadd.f32 %v4371_v25, %v4194_v31 }
0x1cd9   :  { %v4204_v36 = vadd.f32 %v4200_v27, %v4012_v16 }
0x1cda   :  { %v4203_v37 = vadd.f32 %v4195_v34, %v4011_v15 }
0x1cdb   :  { %v4212_v38 = vsel %vm142_vm0, %v4204_v36, 0.0 }
0x1cdc   :  { %v4213_v32 = vrot.slane %v4212_v38, 4  ;;  %v4205_v35 = vsel %vm142_vm0, %v4203_v37, 0.0 }
0x1cdd   :  { %v4206_v39 = vrot.slane %v4205_v35, 4 }
0x1cde   :  { %v4214_v40 = vadd.f32 %v4213_v32, %v4212_v38 }
0x1cdf   :  { %v4207_v41 = vadd.f32 %v4206_v39, %v4205_v35 }
0x1ce0   :  { %v4215_v42 = vrot.slane %v4214_v40, 2 }
0x1ce1   :  { %v4208_v43 = vrot.slane %v4207_v41, 2 }
0x1ce2   :  { %v4216_v44 = vadd.f32 %v4215_v42, %v4214_v40 }
0x1ce3   :  { %v4209_v45 = vadd.f32 %v4208_v43, %v4207_v41 }
0x1ce4   :  { %v4217_v33 = vrot.slane %v4216_v44, 1 }
0x1ce5   :  { %v4210_v46 = vrot.slane %v4209_v45, 1 }
0x1ce6   :  { %v4218_v47 = vadd.f32 %v4217_v33, %v4216_v44 }
0x1ce7   :  { %v4211_v48 = vadd.f32 %v4210_v46, %v4209_v45 }
0x1ce8   :  { %v4220_v60 = vmul.f32 0.125, %v4218_v47 }
0x1ce9   :  { %v4219_v49 = vmul.f32 0.125, %v4211_v48 }
0x1cea   :  { %v4222_v59 = vsub.f32 %v4204_v36, %v4220_v60 }
0x1ceb   :  { %v4221_v50 = vsub.f32 %v4203_v37, %v4219_v49 }
0x1cec   :  { %v4224_v51 = vmul.f32 %v4222_v59, %v4222_v59 }
0x1ced   :  { %v4223_v52 = vmul.f32 %v4221_v50, %v4221_v50 }
0x1cee   :  { %v4232_v53 = vsel %vm142_vm0, %v4224_v51, 0.0 }
0x1cef   :  { %v4233_v54 = vrot.slane %v4232_v53, 4  ;;  %v4225_v55 = vsel %vm142_vm0, %v4223_v52, 0.0 }
0x1cf0   :  { %v4226_v56 = vrot.slane %v4225_v55, 4 }
0x1cf1   :  { %v4234_v57 = vadd.f32 %v4233_v54, %v4232_v53 }
0x1cf2   :  { %v4227_v58 = vadd.f32 %v4226_v56, %v4225_v55 }
0x1cf3   :  { %v4235_v30 = vrot.slane %v4234_v57, 2 }
0x1cf4   :  { %v4228_v61 = vrot.slane %v4227_v58, 2 }
0x1cf5   :  { %v4236_v62 = vadd.f32 %v4235_v30, %v4234_v57 }
0x1cf6   :  { %v4229_v0 = vadd.f32 %v4228_v61, %v4227_v58 }
0x1cf7   :  { %v4237_v3 = vrot.slane %v4236_v62, 1 }
0x1cf8   :  { %v4230_v4 = vrot.slane %v4229_v0, 1 }
0x1cf9   :  { %v4238_v2 = vadd.f32 %v4237_v3, %v4236_v62 }
0x1cfa   :  { %v4231_v5 = vadd.f32 %v4230_v4, %v4229_v0 }
0x1cfb   :  { %v4240_v1 = vmul.f32 0.125, %v4238_v2 }
0x1cfc   :  { %v4239_v6 = vmul.f32 0.125, %v4231_v5 }
0x1cfd   :  { %v4242_v7 = vadd.f32 1e-05, %v4240_v1 }
0x1cfe   :  { %v4241_v8 = vadd.f32 1e-05, %v4239_v6 }
0x1cff   :  { %4964 = vrsqrt.f32 %v4242_v7 }
0x1d00   :  { %4966 = vrsqrt.f32 %v4241_v8 }
0x1d09   :  { %v4965_v9 = vpop.eup %4964 }
0x1d0a   :  { %v4967_v63 = vpop.eup %4966  ;;  %v4246_v11 = vmul.f32 %v4965_v9, %v4222_v59 }
0x1d0b   :  { %v4245_v12 = vmul.f32 %v4967_v63, %v4221_v50 }
0x1d0c   :  { %v4255_v14 = vmul.f32 %v4374_v10, %v4246_v11 }
0x1d0d   :  { %v4254_v15 = vmul.f32 %v4374_v10, %v4245_v12 }
0x1d0e   :  { %v4264_v16 = vadd.f32 %v4375_v13, %v4255_v14 }
0x1d0f   :  { %v4263_v17 = vadd.f32 %v4375_v13, %v4254_v15 }
0x1d10   :  { %4266 = vst.msk [vmem:[#allocation2 + $0x8] sm:$0xff] %vm142_vm0, %v4264_v16 }
0x1d11   :  { %4265 = vst.msk [vmem:[#allocation2] sm:$0xff] %vm142_vm0, %v4263_v17 }
0x1d12   :  { %4979 = shalt.err (!%p4976_p4)
}
0x1d13   :  { %s4980_s7 = scalar_lea.hbm %s5719_s27, 256 }
0x1d14   :  { %p4981_p5 = scmp.ne.s32.totalorder %s5719_s27, %s4980_s7  ;;  %p4984_p6 = scmp.lt.u32.totalorder %s4980_s7, %s5719_s27 }
0x1d16   :  { %p4986_p7 = pnand %p4984_p6, %p4981_p5 }
0x1d18   :  { %4989 = shalt.err (!%p4986_p7)
}
0x1d19   :  { %s5008_s11 = smov 128   ;;  %s5009_s9 = smov 8  }
0x1d1a   :  { %4278 = dma.vmem_to_hbm [thread:$0]  %s4273_s8, 256, %s5719_s27, [#allocation3], %s5008_s11, %s5008_s11, %s5009_s9  }
0x1d1b   :  { %4990 = dma.done.wait [#allocation3], 256  }
0x1d1c   :  { %4991 = vsyncadd [#allocation3], 4294967040 }
0x1d1d   :  { %4282 = vsyncpa [#allocation3], 1 }

</bundles_post_ra>
